<compile_context>
chip_gen: v7x
topology: tpu7x:2x2x1
jax: 0.10.0
libtpu: 0.0.40
codegen_flags: <defaults>
</compile_context>

<pallas_src>
import functools
import math

import jax
import jax.numpy as jnp
from jax.experimental import pallas as pl
from jax.experimental.pallas import tpu as pltpu


def _set2vec_kernel(x_ref, wl_ref, bl_ref, w1_ref, w2_ref, out_ref, *,
                    num_steps):
    # x_ref  : (1, N, D)  f32  node states of one graph
    # wl_ref : (2D, 4D)   f32  fused LSTM gate weights [f, i, o, c]
    # bl_ref : (1, 4D)    f32  fused LSTM gate biases
    # w1_ref : (D, D)     f32  attention W_1
    # w2_ref : (1, D)     f32  attention W_2 (as a row)
    # out_ref: (1, 1, 2D) f32  final Set2Vec vector for this graph
    D = w1_ref.shape[0]

    x = x_ref[0]              # (N, D)
    wl = wl_ref[...]
    bl = bl_ref[...]
    w1 = w1_ref[...]
    w2 = w2_ref[...]          # (1, D)

    h = jnp.zeros((1, 2 * D), jnp.float32)
    m = jnp.zeros((1, D), jnp.float32)

    # num_steps is a small static int -> unrolled at trace time.
    for _ in range(num_steps):
        # --- Set2SetLSTM cell (single fused 4-gate matmul, f32 accumulate) --
        z = jnp.dot(h, wl, preferred_element_type=jnp.float32) + bl   # (1, 4D)
        ft = jax.nn.sigmoid(z[:, 0 * D:1 * D])
        it = jax.nn.sigmoid(z[:, 1 * D:2 * D])
        ot = jax.nn.sigmoid(z[:, 2 * D:3 * D])
        ct = jnp.tanh(z[:, 3 * D:4 * D])
        m = ft * m + it * ct
        hl = ot * jnp.tanh(m)                                          # (1, D)

        # --- attention readout over the N set elements ----------------------
        e = jnp.tanh(
            jnp.dot(hl, w1, preferred_element_type=jnp.float32) + x)   # (N, D)
        energy = jnp.sum(e * w2, axis=-1, keepdims=True)               # (N, 1)
        energy = energy - jnp.max(energy, axis=0, keepdims=True)
        p = jnp.exp(energy)
        att = p / jnp.sum(p, axis=0, keepdims=True)                    # (N, 1)
        read = jnp.sum(x * att, axis=0, keepdims=True)                 # (1, D)

        h = jnp.concatenate([hl, read], axis=1)                        # (1, 2D)

    out_ref[...] = h.reshape(1, 1, 2 * D).astype(out_ref.dtype)


def set2vec(input_set, w_lstm, b_lstm, w1, w2, *, num_steps):
    """Fused Set2Vec readout.

    input_set: (B, N, D) f32 node states (one row of graphs, equal N).
    w_lstm:    (2D, 4D)  f32 fused LSTM gate weights [f, i, o, c].
    b_lstm:    (4D,)     f32 fused LSTM gate biases.
    w1:        (D, D)    f32 attention W_1.
    w2:        (D, 1)    f32 attention W_2.
    Returns (B, 2D) f32 — torch.cat([hidden, read], dim=1) after num_steps.
    """
    B, N, D = input_set.shape
    assert w_lstm.shape == (2 * D, 4 * D)
    assert b_lstm.shape == (4 * D,)
    assert w1.shape == (D, D)
    assert w2.shape == (D, 1)

    x = input_set.astype(jnp.float32)
    bl = b_lstm.reshape(1, 4 * D).astype(jnp.float32)
    w2_row = w2.reshape(1, D).astype(jnp.float32)   # (D,1) -> (1,D), same data

    kernel = functools.partial(_set2vec_kernel, num_steps=num_steps)

    out = pl.pallas_call(
        kernel,
        out_shape=jax.ShapeDtypeStruct((B, 1, 2 * D), jnp.float32),
        grid=(B,),
        in_specs=[
            pl.BlockSpec((1, N, D), lambda b: (b, 0, 0)),       # graph b
            pl.BlockSpec((2 * D, 4 * D), lambda b: (0, 0)),     # LSTM W (resident)
            pl.BlockSpec((1, 4 * D), lambda b: (0, 0)),         # LSTM b (resident)
            pl.BlockSpec((D, D), lambda b: (0, 0)),             # W_1 (resident)
            pl.BlockSpec((1, D), lambda b: (0, 0)),             # W_2 row (resident)
        ],
        out_specs=pl.BlockSpec((1, 1, 2 * D), lambda b: (b, 0, 0)),
        compiler_params=pltpu.CompilerParams(
            dimension_semantics=("parallel",),
        ),
    )(x, w_lstm.astype(jnp.float32), bl, w1.astype(jnp.float32), w2_row)

    return out.reshape(B, 2 * D)


def _init_params(hidden_dim, key):
    """Xavier-uniform weights, zero biases — matches the PyTorch _init_param.

    Returns (w_lstm (2D,4D) [f,i,o,c], b_lstm (4D,), W_1 (D,D), W_2 (D,1))."""
    D = hidden_dim
    k_gates, k_w1, k_w2 = jax.random.split(key, 3)

    bound_g = math.sqrt(6.0 / (2 * D + D))
    ws = []
    for k in jax.random.split(k_gates, 4):
        # PyTorch Linear weight is (out, in) = (D, 2D); transpose for x @ W.
        w_pt = jax.random.uniform(k, (D, 2 * D), jnp.float32, -bound_g, bound_g)
        ws.append(w_pt.T)                                   # (2D, D)
    w_lstm = jnp.concatenate(ws, axis=1)                    # (2D, 4D)
    b_lstm = jnp.zeros((4 * D,), jnp.float32)

    bound_1 = math.sqrt(6.0 / (D + D))
    w1 = jax.random.uniform(k_w1, (D, D), jnp.float32, -bound_1, bound_1)
    bound_2 = math.sqrt(6.0 / (D + 1))
    w2 = jax.random.uniform(k_w2, (D, 1), jnp.float32, -bound_2, bound_2)
    return w_lstm, b_lstm, w1, w2


def _set2vec_reference(x, w_lstm, b_lstm, w1, w2, *, num_steps):
    """Pure-JAX f32 reference of Set2Vec for one graph. x: (N, D) -> (1, 2D)."""
    D = x.shape[1]
    prec = jax.lax.Precision.HIGHEST
    h = jnp.zeros((1, 2 * D), jnp.float32)
    m = jnp.zeros((1, D), jnp.float32)
    for _ in range(num_steps):
        z = jnp.dot(h, w_lstm, precision=prec) + b_lstm[None, :]
        ft = jax.nn.sigmoid(z[:, 0 * D:1 * D])
        it = jax.nn.sigmoid(z[:, 1 * D:2 * D])
        ot = jax.nn.sigmoid(z[:, 2 * D:3 * D])
        ct = jnp.tanh(z[:, 3 * D:4 * D])
        m = ft * m + it * ct
        hl = ot * jnp.tanh(m)
        energy = jnp.dot(jnp.tanh(jnp.dot(hl, w1, precision=prec) + x), w2,
                         precision=prec)                       # (N, 1)
        att = jax.nn.softmax(energy, axis=0)
        read = jnp.sum(x * att, axis=0, keepdims=True)
        h = jnp.concatenate([hl, read], axis=1)
    return h


if __name__ == "__main__":
    D = 32   # hidden_dim (config.model.hidden_dim)
    N = 16   # nodes per graph
    B = 2    # batch of graphs (>= 2 grid steps -> both v7x TensorCores busy)
    T = 6    # num_step_set2vec

    key = jax.random.PRNGKey(0)
    k_x, k_w = jax.random.split(key)

    w_lstm, b_lstm, w1, w2 = _init_params(D, k_w)
    # Node states as they would arrive from the message-passing stage.
    x = jax.random.normal(k_x, (B, N, D), jnp.float32)

    out = set2vec(x, w_lstm, b_lstm, w1, w2, num_steps=T)
    jax.block_until_ready(out)

    ref = jnp.stack([
        _set2vec_reference(x[b], w_lstm, b_lstm, w1, w2, num_steps=T)[0]
        for b in range(B)
    ])

    assert out.shape == (B, 2 * D)
    assert jnp.allclose(out, ref, atol=5e-3, rtol=5e-3), float(
        jnp.max(jnp.abs(out - ref)))

    print("KERNEL_OK")
</pallas_src>

<mosaic_0001>
module attributes {stable_mosaic.version = 11 : i64} {
  func.func @_set2vec_kernel(%arg0: i32, %arg1: memref<1x16x32xf32, #tpu.memory_space<vmem>>, %arg2: memref<64x128xf32, #tpu.memory_space<vmem>>, %arg3: memref<1x128xf32, #tpu.memory_space<vmem>>, %arg4: memref<32x32xf32, #tpu.memory_space<vmem>>, %arg5: memref<1x32xf32, #tpu.memory_space<vmem>>, %arg6: memref<1x1x64xf32, #tpu.memory_space<vmem>>) attributes {dimension_semantics = [#tpu.dimension_semantics<parallel>], iteration_bounds = array<i64: 2>, scalar_prefetch = 0 : i64, scratch_operands = 0 : i64, tpu.core_type = #tpu.core_type<tc>, window_params = [{transform_indices = @transform_0, window_bounds = array<i64: 1, 16, 32>}, {pipeline_mode = #tpu.pipeline_mode<synchronous>, transform_indices = @transform_1, window_bounds = array<i64: 64, 128>}, {pipeline_mode = #tpu.pipeline_mode<synchronous>, transform_indices = @transform_2, window_bounds = array<i64: 1, 128>}, {pipeline_mode = #tpu.pipeline_mode<synchronous>, transform_indices = @transform_3, window_bounds = array<i64: 32, 32>}, {pipeline_mode = #tpu.pipeline_mode<synchronous>, transform_indices = @transform_4, window_bounds = array<i64: 1, 32>}, {transform_indices = @transform_5, window_bounds = array<i64: 1, 1, 64>}]} {
    %c0 = arith.constant 0 : index
    %c0_0 = arith.constant 0 : index
    %c0_1 = arith.constant 0 : index
    %0 = vector.load %arg1[%c0, %c0_0, %c0_1] : memref<1x16x32xf32, #tpu.memory_space<vmem>>, vector<1x16x32xf32>
    %1 = vector.shape_cast %0 : vector<1x16x32xf32> to vector<16x32xf32>
    %c0_2 = arith.constant 0 : index
    %c0_3 = arith.constant 0 : index
    %2 = vector.load %arg2[%c0_2, %c0_3] : memref<64x128xf32, #tpu.memory_space<vmem>>, vector<64x128xf32>
    %c0_4 = arith.constant 0 : index
    %c0_5 = arith.constant 0 : index
    %3 = vector.load %arg3[%c0_4, %c0_5] : memref<1x128xf32, #tpu.memory_space<vmem>>, vector<1x128xf32>
    %c0_6 = arith.constant 0 : index
    %c0_7 = arith.constant 0 : index
    %4 = vector.load %arg4[%c0_6, %c0_7] : memref<32x32xf32, #tpu.memory_space<vmem>>, vector<32x32xf32>
    %c0_8 = arith.constant 0 : index
    %c0_9 = arith.constant 0 : index
    %5 = vector.load %arg5[%c0_8, %c0_9] : memref<1x32xf32, #tpu.memory_space<vmem>>, vector<1x32xf32>
    %cst = arith.constant 0.000000e+00 : f32
    %6 = vector.broadcast %cst : f32 to vector<1x64xf32>
    %cst_10 = arith.constant 0.000000e+00 : f32
    %7 = vector.broadcast %cst_10 : f32 to vector<1x32xf32>
    %cst_11 = arith.constant dense<0.000000e+00> : vector<1x128xf32>
    %8 = tpu.matmul %6, %2, %cst_11 {dimension_numbers = #tpu.dot_dimension_numbers<[1], [0], [0], [1], [0, 0, 1, 1], [], []>} : vector<1x64xf32>, vector<64x128xf32>, vector<1x128xf32> -> vector<1x128xf32>
    %9 = arith.addf %8, %3 : vector<1x128xf32>
    %10 = vector.extract_strided_slice %9 {offsets = [0, 0], sizes = [1, 32], strides = [1, 1]} : vector<1x128xf32> to vector<1x32xf32>
    %11 = arith.negf %10 : vector<1x32xf32>
    %12 = math.exp %11 : vector<1x32xf32>
    %cst_12 = arith.constant 1.000000e+00 : f32
    %13 = vector.broadcast %cst_12 : f32 to vector<1x32xf32>
    %14 = arith.addf %13, %12 : vector<1x32xf32>
    %15 = arith.divf %13, %14 : vector<1x32xf32>
    %16 = vector.extract_strided_slice %9 {offsets = [0, 32], sizes = [1, 32], strides = [1, 1]} : vector<1x128xf32> to vector<1x32xf32>
    %17 = arith.negf %16 : vector<1x32xf32>
    %18 = math.exp %17 : vector<1x32xf32>
    %cst_13 = arith.constant 1.000000e+00 : f32
    %19 = vector.broadcast %cst_13 : f32 to vector<1x32xf32>
    %20 = arith.addf %19, %18 : vector<1x32xf32>
    %21 = arith.divf %19, %20 : vector<1x32xf32>
    %22 = vector.extract_strided_slice %9 {offsets = [0, 64], sizes = [1, 32], strides = [1, 1]} : vector<1x128xf32> to vector<1x32xf32>
    %23 = arith.negf %22 : vector<1x32xf32>
    %24 = math.exp %23 : vector<1x32xf32>
    %cst_14 = arith.constant 1.000000e+00 : f32
    %25 = vector.broadcast %cst_14 : f32 to vector<1x32xf32>
    %26 = arith.addf %25, %24 : vector<1x32xf32>
    %27 = arith.divf %25, %26 : vector<1x32xf32>
    %28 = vector.extract_strided_slice %9 {offsets = [0, 96], sizes = [1, 32], strides = [1, 1]} : vector<1x128xf32> to vector<1x32xf32>
    %29 = math.tanh %28 : vector<1x32xf32>
    %30 = arith.mulf %15, %7 : vector<1x32xf32>
    %31 = arith.mulf %21, %29 : vector<1x32xf32>
    %32 = arith.addf %30, %31 : vector<1x32xf32>
    %33 = math.tanh %32 : vector<1x32xf32>
    %34 = arith.mulf %27, %33 : vector<1x32xf32>
    %cst_15 = arith.constant dense<0.000000e+00> : vector<1x32xf32>
    %35 = tpu.matmul %34, %4, %cst_15 {dimension_numbers = #tpu.dot_dimension_numbers<[1], [0], [0], [1], [0, 0, 1, 1], [], []>} : vector<1x32xf32>, vector<32x32xf32>, vector<1x32xf32> -> vector<1x32xf32>
    %36 = vector.broadcast %35 : vector<1x32xf32> to vector<16x32xf32>
    %37 = arith.addf %36, %1 : vector<16x32xf32>
    %38 = math.tanh %37 : vector<16x32xf32>
    %39 = vector.broadcast %5 : vector<1x32xf32> to vector<16x32xf32>
    %40 = arith.mulf %38, %39 : vector<16x32xf32>
    %cst_16 = arith.constant dense<0.000000e+00> : vector<16xf32>
    %41 = vector.multi_reduction <add>, %40, %cst_16 [1] : vector<16x32xf32> to vector<16xf32>
    %42 = vector.shape_cast %41 : vector<16xf32> to vector<16x1xf32>
    %cst_17 = arith.constant dense<0xFF800000> : vector<1xf32>
    %43 = vector.multi_reduction <maximumf>, %42, %cst_17 [0] : vector<16x1xf32> to vector<1xf32>
    %44 = vector.shape_cast %43 : vector<1xf32> to vector<1x1xf32>
    %45 = vector.broadcast %44 : vector<1x1xf32> to vector<16x1xf32>
    %46 = arith.subf %42, %45 : vector<16x1xf32>
    %47 = math.exp %46 : vector<16x1xf32>
    %cst_18 = arith.constant dense<0.000000e+00> : vector<1xf32>
    %48 = vector.multi_reduction <add>, %47, %cst_18 [0] : vector<16x1xf32> to vector<1xf32>
    %49 = vector.shape_cast %48 : vector<1xf32> to vector<1x1xf32>
    %50 = vector.broadcast %49 : vector<1x1xf32> to vector<16x1xf32>
    %51 = arith.divf %47, %50 : vector<16x1xf32>
    %52 = vector.broadcast %51 : vector<16x1xf32> to vector<16x32xf32>
    %53 = arith.mulf %1, %52 : vector<16x32xf32>
    %cst_19 = arith.constant dense<0.000000e+00> : vector<32xf32>
    %54 = vector.multi_reduction <add>, %53, %cst_19 [0] : vector<16x32xf32> to vector<32xf32>
    %55 = vector.shape_cast %54 : vector<32xf32> to vector<1x32xf32>
    %56 = tpu.concatenate %34, %55 in 1 : vector<1x32xf32>, vector<1x32xf32> -> vector<1x64xf32>
    %cst_20 = arith.constant dense<0.000000e+00> : vector<1x128xf32>
    %57 = tpu.matmul %56, %2, %cst_20 {dimension_numbers = #tpu.dot_dimension_numbers<[1], [0], [0], [1], [0, 0, 1, 1], [], []>} : vector<1x64xf32>, vector<64x128xf32>, vector<1x128xf32> -> vector<1x128xf32>
    %58 = arith.addf %57, %3 : vector<1x128xf32>
    %59 = vector.extract_strided_slice %58 {offsets = [0, 0], sizes = [1, 32], strides = [1, 1]} : vector<1x128xf32> to vector<1x32xf32>
    %60 = arith.negf %59 : vector<1x32xf32>
    %61 = math.exp %60 : vector<1x32xf32>
    %cst_21 = arith.constant 1.000000e+00 : f32
    %62 = vector.broadcast %cst_21 : f32 to vector<1x32xf32>
    %63 = arith.addf %62, %61 : vector<1x32xf32>
    %64 = arith.divf %62, %63 : vector<1x32xf32>
    %65 = vector.extract_strided_slice %58 {offsets = [0, 32], sizes = [1, 32], strides = [1, 1]} : vector<1x128xf32> to vector<1x32xf32>
    %66 = arith.negf %65 : vector<1x32xf32>
    %67 = math.exp %66 : vector<1x32xf32>
    %cst_22 = arith.constant 1.000000e+00 : f32
    %68 = vector.broadcast %cst_22 : f32 to vector<1x32xf32>
    %69 = arith.addf %68, %67 : vector<1x32xf32>
    %70 = arith.divf %68, %69 : vector<1x32xf32>
    %71 = vector.extract_strided_slice %58 {offsets = [0, 64], sizes = [1, 32], strides = [1, 1]} : vector<1x128xf32> to vector<1x32xf32>
    %72 = arith.negf %71 : vector<1x32xf32>
    %73 = math.exp %72 : vector<1x32xf32>
    %cst_23 = arith.constant 1.000000e+00 : f32
    %74 = vector.broadcast %cst_23 : f32 to vector<1x32xf32>
    %75 = arith.addf %74, %73 : vector<1x32xf32>
    %76 = arith.divf %74, %75 : vector<1x32xf32>
    %77 = vector.extract_strided_slice %58 {offsets = [0, 96], sizes = [1, 32], strides = [1, 1]} : vector<1x128xf32> to vector<1x32xf32>
    %78 = math.tanh %77 : vector<1x32xf32>
    %79 = arith.mulf %64, %32 : vector<1x32xf32>
    %80 = arith.mulf %70, %78 : vector<1x32xf32>
    %81 = arith.addf %79, %80 : vector<1x32xf32>
    %82 = math.tanh %81 : vector<1x32xf32>
    %83 = arith.mulf %76, %82 : vector<1x32xf32>
    %cst_24 = arith.constant dense<0.000000e+00> : vector<1x32xf32>
    %84 = tpu.matmul %83, %4, %cst_24 {dimension_numbers = #tpu.dot_dimension_numbers<[1], [0], [0], [1], [0, 0, 1, 1], [], []>} : vector<1x32xf32>, vector<32x32xf32>, vector<1x32xf32> -> vector<1x32xf32>
    %85 = vector.broadcast %84 : vector<1x32xf32> to vector<16x32xf32>
    %86 = arith.addf %85, %1 : vector<16x32xf32>
    %87 = math.tanh %86 : vector<16x32xf32>
    %88 = vector.broadcast %5 : vector<1x32xf32> to vector<16x32xf32>
    %89 = arith.mulf %87, %88 : vector<16x32xf32>
    %cst_25 = arith.constant dense<0.000000e+00> : vector<16xf32>
    %90 = vector.multi_reduction <add>, %89, %cst_25 [1] : vector<16x32xf32> to vector<16xf32>
    %91 = vector.shape_cast %90 : vector<16xf32> to vector<16x1xf32>
    %cst_26 = arith.constant dense<0xFF800000> : vector<1xf32>
    %92 = vector.multi_reduction <maximumf>, %91, %cst_26 [0] : vector<16x1xf32> to vector<1xf32>
    %93 = vector.shape_cast %92 : vector<1xf32> to vector<1x1xf32>
    %94 = vector.broadcast %93 : vector<1x1xf32> to vector<16x1xf32>
    %95 = arith.subf %91, %94 : vector<16x1xf32>
    %96 = math.exp %95 : vector<16x1xf32>
    %cst_27 = arith.constant dense<0.000000e+00> : vector<1xf32>
    %97 = vector.multi_reduction <add>, %96, %cst_27 [0] : vector<16x1xf32> to vector<1xf32>
    %98 = vector.shape_cast %97 : vector<1xf32> to vector<1x1xf32>
    %99 = vector.broadcast %98 : vector<1x1xf32> to vector<16x1xf32>
    %100 = arith.divf %96, %99 : vector<16x1xf32>
    %101 = vector.broadcast %100 : vector<16x1xf32> to vector<16x32xf32>
    %102 = arith.mulf %1, %101 : vector<16x32xf32>
    %cst_28 = arith.constant dense<0.000000e+00> : vector<32xf32>
    %103 = vector.multi_reduction <add>, %102, %cst_28 [0] : vector<16x32xf32> to vector<32xf32>
    %104 = vector.shape_cast %103 : vector<32xf32> to vector<1x32xf32>
    %105 = tpu.concatenate %83, %104 in 1 : vector<1x32xf32>, vector<1x32xf32> -> vector<1x64xf32>
    %cst_29 = arith.constant dense<0.000000e+00> : vector<1x128xf32>
    %106 = tpu.matmul %105, %2, %cst_29 {dimension_numbers = #tpu.dot_dimension_numbers<[1], [0], [0], [1], [0, 0, 1, 1], [], []>} : vector<1x64xf32>, vector<64x128xf32>, vector<1x128xf32> -> vector<1x128xf32>
    %107 = arith.addf %106, %3 : vector<1x128xf32>
    %108 = vector.extract_strided_slice %107 {offsets = [0, 0], sizes = [1, 32], strides = [1, 1]} : vector<1x128xf32> to vector<1x32xf32>
    %109 = arith.negf %108 : vector<1x32xf32>
    %110 = math.exp %109 : vector<1x32xf32>
    %cst_30 = arith.constant 1.000000e+00 : f32
    %111 = vector.broadcast %cst_30 : f32 to vector<1x32xf32>
    %112 = arith.addf %111, %110 : vector<1x32xf32>
    %113 = arith.divf %111, %112 : vector<1x32xf32>
    %114 = vector.extract_strided_slice %107 {offsets = [0, 32], sizes = [1, 32], strides = [1, 1]} : vector<1x128xf32> to vector<1x32xf32>
    %115 = arith.negf %114 : vector<1x32xf32>
    %116 = math.exp %115 : vector<1x32xf32>
    %cst_31 = arith.constant 1.000000e+00 : f32
    %117 = vector.broadcast %cst_31 : f32 to vector<1x32xf32>
    %118 = arith.addf %117, %116 : vector<1x32xf32>
    %119 = arith.divf %117, %118 : vector<1x32xf32>
    %120 = vector.extract_strided_slice %107 {offsets = [0, 64], sizes = [1, 32], strides = [1, 1]} : vector<1x128xf32> to vector<1x32xf32>
    %121 = arith.negf %120 : vector<1x32xf32>
    %122 = math.exp %121 : vector<1x32xf32>
    %cst_32 = arith.constant 1.000000e+00 : f32
    %123 = vector.broadcast %cst_32 : f32 to vector<1x32xf32>
    %124 = arith.addf %123, %122 : vector<1x32xf32>
    %125 = arith.divf %123, %124 : vector<1x32xf32>
    %126 = vector.extract_strided_slice %107 {offsets = [0, 96], sizes = [1, 32], strides = [1, 1]} : vector<1x128xf32> to vector<1x32xf32>
    %127 = math.tanh %126 : vector<1x32xf32>
    %128 = arith.mulf %113, %81 : vector<1x32xf32>
    %129 = arith.mulf %119, %127 : vector<1x32xf32>
    %130 = arith.addf %128, %129 : vector<1x32xf32>
    %131 = math.tanh %130 : vector<1x32xf32>
    %132 = arith.mulf %125, %131 : vector<1x32xf32>
    %cst_33 = arith.constant dense<0.000000e+00> : vector<1x32xf32>
    %133 = tpu.matmul %132, %4, %cst_33 {dimension_numbers = #tpu.dot_dimension_numbers<[1], [0], [0], [1], [0, 0, 1, 1], [], []>} : vector<1x32xf32>, vector<32x32xf32>, vector<1x32xf32> -> vector<1x32xf32>
    %134 = vector.broadcast %133 : vector<1x32xf32> to vector<16x32xf32>
    %135 = arith.addf %134, %1 : vector<16x32xf32>
    %136 = math.tanh %135 : vector<16x32xf32>
    %137 = vector.broadcast %5 : vector<1x32xf32> to vector<16x32xf32>
    %138 = arith.mulf %136, %137 : vector<16x32xf32>
    %cst_34 = arith.constant dense<0.000000e+00> : vector<16xf32>
    %139 = vector.multi_reduction <add>, %138, %cst_34 [1] : vector<16x32xf32> to vector<16xf32>
    %140 = vector.shape_cast %139 : vector<16xf32> to vector<16x1xf32>
    %cst_35 = arith.constant dense<0xFF800000> : vector<1xf32>
    %141 = vector.multi_reduction <maximumf>, %140, %cst_35 [0] : vector<16x1xf32> to vector<1xf32>
    %142 = vector.shape_cast %141 : vector<1xf32> to vector<1x1xf32>
    %143 = vector.broadcast %142 : vector<1x1xf32> to vector<16x1xf32>
    %144 = arith.subf %140, %143 : vector<16x1xf32>
    %145 = math.exp %144 : vector<16x1xf32>
    %cst_36 = arith.constant dense<0.000000e+00> : vector<1xf32>
    %146 = vector.multi_reduction <add>, %145, %cst_36 [0] : vector<16x1xf32> to vector<1xf32>
    %147 = vector.shape_cast %146 : vector<1xf32> to vector<1x1xf32>
    %148 = vector.broadcast %147 : vector<1x1xf32> to vector<16x1xf32>
    %149 = arith.divf %145, %148 : vector<16x1xf32>
    %150 = vector.broadcast %149 : vector<16x1xf32> to vector<16x32xf32>
    %151 = arith.mulf %1, %150 : vector<16x32xf32>
    %cst_37 = arith.constant dense<0.000000e+00> : vector<32xf32>
    %152 = vector.multi_reduction <add>, %151, %cst_37 [0] : vector<16x32xf32> to vector<32xf32>
    %153 = vector.shape_cast %152 : vector<32xf32> to vector<1x32xf32>
    %154 = tpu.concatenate %132, %153 in 1 : vector<1x32xf32>, vector<1x32xf32> -> vector<1x64xf32>
    %cst_38 = arith.constant dense<0.000000e+00> : vector<1x128xf32>
    %155 = tpu.matmul %154, %2, %cst_38 {dimension_numbers = #tpu.dot_dimension_numbers<[1], [0], [0], [1], [0, 0, 1, 1], [], []>} : vector<1x64xf32>, vector<64x128xf32>, vector<1x128xf32> -> vector<1x128xf32>
    %156 = arith.addf %155, %3 : vector<1x128xf32>
    %157 = vector.extract_strided_slice %156 {offsets = [0, 0], sizes = [1, 32], strides = [1, 1]} : vector<1x128xf32> to vector<1x32xf32>
    %158 = arith.negf %157 : vector<1x32xf32>
    %159 = math.exp %158 : vector<1x32xf32>
    %cst_39 = arith.constant 1.000000e+00 : f32
    %160 = vector.broadcast %cst_39 : f32 to vector<1x32xf32>
    %161 = arith.addf %160, %159 : vector<1x32xf32>
    %162 = arith.divf %160, %161 : vector<1x32xf32>
    %163 = vector.extract_strided_slice %156 {offsets = [0, 32], sizes = [1, 32], strides = [1, 1]} : vector<1x128xf32> to vector<1x32xf32>
    %164 = arith.negf %163 : vector<1x32xf32>
    %165 = math.exp %164 : vector<1x32xf32>
    %cst_40 = arith.constant 1.000000e+00 : f32
    %166 = vector.broadcast %cst_40 : f32 to vector<1x32xf32>
    %167 = arith.addf %166, %165 : vector<1x32xf32>
    %168 = arith.divf %166, %167 : vector<1x32xf32>
    %169 = vector.extract_strided_slice %156 {offsets = [0, 64], sizes = [1, 32], strides = [1, 1]} : vector<1x128xf32> to vector<1x32xf32>
    %170 = arith.negf %169 : vector<1x32xf32>
    %171 = math.exp %170 : vector<1x32xf32>
    %cst_41 = arith.constant 1.000000e+00 : f32
    %172 = vector.broadcast %cst_41 : f32 to vector<1x32xf32>
    %173 = arith.addf %172, %171 : vector<1x32xf32>
    %174 = arith.divf %172, %173 : vector<1x32xf32>
    %175 = vector.extract_strided_slice %156 {offsets = [0, 96], sizes = [1, 32], strides = [1, 1]} : vector<1x128xf32> to vector<1x32xf32>
    %176 = math.tanh %175 : vector<1x32xf32>
    %177 = arith.mulf %162, %130 : vector<1x32xf32>
    %178 = arith.mulf %168, %176 : vector<1x32xf32>
    %179 = arith.addf %177, %178 : vector<1x32xf32>
    %180 = math.tanh %179 : vector<1x32xf32>
    %181 = arith.mulf %174, %180 : vector<1x32xf32>
    %cst_42 = arith.constant dense<0.000000e+00> : vector<1x32xf32>
    %182 = tpu.matmul %181, %4, %cst_42 {dimension_numbers = #tpu.dot_dimension_numbers<[1], [0], [0], [1], [0, 0, 1, 1], [], []>} : vector<1x32xf32>, vector<32x32xf32>, vector<1x32xf32> -> vector<1x32xf32>
    %183 = vector.broadcast %182 : vector<1x32xf32> to vector<16x32xf32>
    %184 = arith.addf %183, %1 : vector<16x32xf32>
    %185 = math.tanh %184 : vector<16x32xf32>
    %186 = vector.broadcast %5 : vector<1x32xf32> to vector<16x32xf32>
    %187 = arith.mulf %185, %186 : vector<16x32xf32>
    %cst_43 = arith.constant dense<0.000000e+00> : vector<16xf32>
    %188 = vector.multi_reduction <add>, %187, %cst_43 [1] : vector<16x32xf32> to vector<16xf32>
    %189 = vector.shape_cast %188 : vector<16xf32> to vector<16x1xf32>
    %cst_44 = arith.constant dense<0xFF800000> : vector<1xf32>
    %190 = vector.multi_reduction <maximumf>, %189, %cst_44 [0] : vector<16x1xf32> to vector<1xf32>
    %191 = vector.shape_cast %190 : vector<1xf32> to vector<1x1xf32>
    %192 = vector.broadcast %191 : vector<1x1xf32> to vector<16x1xf32>
    %193 = arith.subf %189, %192 : vector<16x1xf32>
    %194 = math.exp %193 : vector<16x1xf32>
    %cst_45 = arith.constant dense<0.000000e+00> : vector<1xf32>
    %195 = vector.multi_reduction <add>, %194, %cst_45 [0] : vector<16x1xf32> to vector<1xf32>
    %196 = vector.shape_cast %195 : vector<1xf32> to vector<1x1xf32>
    %197 = vector.broadcast %196 : vector<1x1xf32> to vector<16x1xf32>
    %198 = arith.divf %194, %197 : vector<16x1xf32>
    %199 = vector.broadcast %198 : vector<16x1xf32> to vector<16x32xf32>
    %200 = arith.mulf %1, %199 : vector<16x32xf32>
    %cst_46 = arith.constant dense<0.000000e+00> : vector<32xf32>
    %201 = vector.multi_reduction <add>, %200, %cst_46 [0] : vector<16x32xf32> to vector<32xf32>
    %202 = vector.shape_cast %201 : vector<32xf32> to vector<1x32xf32>
    %203 = tpu.concatenate %181, %202 in 1 : vector<1x32xf32>, vector<1x32xf32> -> vector<1x64xf32>
    %cst_47 = arith.constant dense<0.000000e+00> : vector<1x128xf32>
    %204 = tpu.matmul %203, %2, %cst_47 {dimension_numbers = #tpu.dot_dimension_numbers<[1], [0], [0], [1], [0, 0, 1, 1], [], []>} : vector<1x64xf32>, vector<64x128xf32>, vector<1x128xf32> -> vector<1x128xf32>
    %205 = arith.addf %204, %3 : vector<1x128xf32>
    %206 = vector.extract_strided_slice %205 {offsets = [0, 0], sizes = [1, 32], strides = [1, 1]} : vector<1x128xf32> to vector<1x32xf32>
    %207 = arith.negf %206 : vector<1x32xf32>
    %208 = math.exp %207 : vector<1x32xf32>
    %cst_48 = arith.constant 1.000000e+00 : f32
    %209 = vector.broadcast %cst_48 : f32 to vector<1x32xf32>
    %210 = arith.addf %209, %208 : vector<1x32xf32>
    %211 = arith.divf %209, %210 : vector<1x32xf32>
    %212 = vector.extract_strided_slice %205 {offsets = [0, 32], sizes = [1, 32], strides = [1, 1]} : vector<1x128xf32> to vector<1x32xf32>
    %213 = arith.negf %212 : vector<1x32xf32>
    %214 = math.exp %213 : vector<1x32xf32>
    %cst_49 = arith.constant 1.000000e+00 : f32
    %215 = vector.broadcast %cst_49 : f32 to vector<1x32xf32>
    %216 = arith.addf %215, %214 : vector<1x32xf32>
    %217 = arith.divf %215, %216 : vector<1x32xf32>
    %218 = vector.extract_strided_slice %205 {offsets = [0, 64], sizes = [1, 32], strides = [1, 1]} : vector<1x128xf32> to vector<1x32xf32>
    %219 = arith.negf %218 : vector<1x32xf32>
    %220 = math.exp %219 : vector<1x32xf32>
    %cst_50 = arith.constant 1.000000e+00 : f32
    %221 = vector.broadcast %cst_50 : f32 to vector<1x32xf32>
    %222 = arith.addf %221, %220 : vector<1x32xf32>
    %223 = arith.divf %221, %222 : vector<1x32xf32>
    %224 = vector.extract_strided_slice %205 {offsets = [0, 96], sizes = [1, 32], strides = [1, 1]} : vector<1x128xf32> to vector<1x32xf32>
    %225 = math.tanh %224 : vector<1x32xf32>
    %226 = arith.mulf %211, %179 : vector<1x32xf32>
    %227 = arith.mulf %217, %225 : vector<1x32xf32>
    %228 = arith.addf %226, %227 : vector<1x32xf32>
    %229 = math.tanh %228 : vector<1x32xf32>
    %230 = arith.mulf %223, %229 : vector<1x32xf32>
    %cst_51 = arith.constant dense<0.000000e+00> : vector<1x32xf32>
    %231 = tpu.matmul %230, %4, %cst_51 {dimension_numbers = #tpu.dot_dimension_numbers<[1], [0], [0], [1], [0, 0, 1, 1], [], []>} : vector<1x32xf32>, vector<32x32xf32>, vector<1x32xf32> -> vector<1x32xf32>
    %232 = vector.broadcast %231 : vector<1x32xf32> to vector<16x32xf32>
    %233 = arith.addf %232, %1 : vector<16x32xf32>
    %234 = math.tanh %233 : vector<16x32xf32>
    %235 = vector.broadcast %5 : vector<1x32xf32> to vector<16x32xf32>
    %236 = arith.mulf %234, %235 : vector<16x32xf32>
    %cst_52 = arith.constant dense<0.000000e+00> : vector<16xf32>
    %237 = vector.multi_reduction <add>, %236, %cst_52 [1] : vector<16x32xf32> to vector<16xf32>
    %238 = vector.shape_cast %237 : vector<16xf32> to vector<16x1xf32>
    %cst_53 = arith.constant dense<0xFF800000> : vector<1xf32>
    %239 = vector.multi_reduction <maximumf>, %238, %cst_53 [0] : vector<16x1xf32> to vector<1xf32>
    %240 = vector.shape_cast %239 : vector<1xf32> to vector<1x1xf32>
    %241 = vector.broadcast %240 : vector<1x1xf32> to vector<16x1xf32>
    %242 = arith.subf %238, %241 : vector<16x1xf32>
    %243 = math.exp %242 : vector<16x1xf32>
    %cst_54 = arith.constant dense<0.000000e+00> : vector<1xf32>
    %244 = vector.multi_reduction <add>, %243, %cst_54 [0] : vector<16x1xf32> to vector<1xf32>
    %245 = vector.shape_cast %244 : vector<1xf32> to vector<1x1xf32>
    %246 = vector.broadcast %245 : vector<1x1xf32> to vector<16x1xf32>
    %247 = arith.divf %243, %246 : vector<16x1xf32>
    %248 = vector.broadcast %247 : vector<16x1xf32> to vector<16x32xf32>
    %249 = arith.mulf %1, %248 : vector<16x32xf32>
    %cst_55 = arith.constant dense<0.000000e+00> : vector<32xf32>
    %250 = vector.multi_reduction <add>, %249, %cst_55 [0] : vector<16x32xf32> to vector<32xf32>
    %251 = vector.shape_cast %250 : vector<32xf32> to vector<1x32xf32>
    %252 = tpu.concatenate %230, %251 in 1 : vector<1x32xf32>, vector<1x32xf32> -> vector<1x64xf32>
    %cst_56 = arith.constant dense<0.000000e+00> : vector<1x128xf32>
    %253 = tpu.matmul %252, %2, %cst_56 {dimension_numbers = #tpu.dot_dimension_numbers<[1], [0], [0], [1], [0, 0, 1, 1], [], []>} : vector<1x64xf32>, vector<64x128xf32>, vector<1x128xf32> -> vector<1x128xf32>
    %254 = arith.addf %253, %3 : vector<1x128xf32>
    %255 = vector.extract_strided_slice %254 {offsets = [0, 0], sizes = [1, 32], strides = [1, 1]} : vector<1x128xf32> to vector<1x32xf32>
    %256 = arith.negf %255 : vector<1x32xf32>
    %257 = math.exp %256 : vector<1x32xf32>
    %cst_57 = arith.constant 1.000000e+00 : f32
    %258 = vector.broadcast %cst_57 : f32 to vector<1x32xf32>
    %259 = arith.addf %258, %257 : vector<1x32xf32>
    %260 = arith.divf %258, %259 : vector<1x32xf32>
    %261 = vector.extract_strided_slice %254 {offsets = [0, 32], sizes = [1, 32], strides = [1, 1]} : vector<1x128xf32> to vector<1x32xf32>
    %262 = arith.negf %261 : vector<1x32xf32>
    %263 = math.exp %262 : vector<1x32xf32>
    %cst_58 = arith.constant 1.000000e+00 : f32
    %264 = vector.broadcast %cst_58 : f32 to vector<1x32xf32>
    %265 = arith.addf %264, %263 : vector<1x32xf32>
    %266 = arith.divf %264, %265 : vector<1x32xf32>
    %267 = vector.extract_strided_slice %254 {offsets = [0, 64], sizes = [1, 32], strides = [1, 1]} : vector<1x128xf32> to vector<1x32xf32>
    %268 = arith.negf %267 : vector<1x32xf32>
    %269 = math.exp %268 : vector<1x32xf32>
    %cst_59 = arith.constant 1.000000e+00 : f32
    %270 = vector.broadcast %cst_59 : f32 to vector<1x32xf32>
    %271 = arith.addf %270, %269 : vector<1x32xf32>
    %272 = arith.divf %270, %271 : vector<1x32xf32>
    %273 = vector.extract_strided_slice %254 {offsets = [0, 96], sizes = [1, 32], strides = [1, 1]} : vector<1x128xf32> to vector<1x32xf32>
    %274 = math.tanh %273 : vector<1x32xf32>
    %275 = arith.mulf %260, %228 : vector<1x32xf32>
    %276 = arith.mulf %266, %274 : vector<1x32xf32>
    %277 = arith.addf %275, %276 : vector<1x32xf32>
    %278 = math.tanh %277 : vector<1x32xf32>
    %279 = arith.mulf %272, %278 : vector<1x32xf32>
    %cst_60 = arith.constant dense<0.000000e+00> : vector<1x32xf32>
    %280 = tpu.matmul %279, %4, %cst_60 {dimension_numbers = #tpu.dot_dimension_numbers<[1], [0], [0], [1], [0, 0, 1, 1], [], []>} : vector<1x32xf32>, vector<32x32xf32>, vector<1x32xf32> -> vector<1x32xf32>
    %281 = vector.broadcast %280 : vector<1x32xf32> to vector<16x32xf32>
    %282 = arith.addf %281, %1 : vector<16x32xf32>
    %283 = math.tanh %282 : vector<16x32xf32>
    %284 = vector.broadcast %5 : vector<1x32xf32> to vector<16x32xf32>
    %285 = arith.mulf %283, %284 : vector<16x32xf32>
    %cst_61 = arith.constant dense<0.000000e+00> : vector<16xf32>
    %286 = vector.multi_reduction <add>, %285, %cst_61 [1] : vector<16x32xf32> to vector<16xf32>
    %287 = vector.shape_cast %286 : vector<16xf32> to vector<16x1xf32>
    %cst_62 = arith.constant dense<0xFF800000> : vector<1xf32>
    %288 = vector.multi_reduction <maximumf>, %287, %cst_62 [0] : vector<16x1xf32> to vector<1xf32>
    %289 = vector.shape_cast %288 : vector<1xf32> to vector<1x1xf32>
    %290 = vector.broadcast %289 : vector<1x1xf32> to vector<16x1xf32>
    %291 = arith.subf %287, %290 : vector<16x1xf32>
    %292 = math.exp %291 : vector<16x1xf32>
    %cst_63 = arith.constant dense<0.000000e+00> : vector<1xf32>
    %293 = vector.multi_reduction <add>, %292, %cst_63 [0] : vector<16x1xf32> to vector<1xf32>
    %294 = vector.shape_cast %293 : vector<1xf32> to vector<1x1xf32>
    %295 = vector.broadcast %294 : vector<1x1xf32> to vector<16x1xf32>
    %296 = arith.divf %292, %295 : vector<16x1xf32>
    %297 = vector.broadcast %296 : vector<16x1xf32> to vector<16x32xf32>
    %298 = arith.mulf %1, %297 : vector<16x32xf32>
    %cst_64 = arith.constant dense<0.000000e+00> : vector<32xf32>
    %299 = vector.multi_reduction <add>, %298, %cst_64 [0] : vector<16x32xf32> to vector<32xf32>
    %300 = vector.shape_cast %299 : vector<32xf32> to vector<1x32xf32>
    %301 = tpu.concatenate %279, %300 in 1 : vector<1x32xf32>, vector<1x32xf32> -> vector<1x64xf32>
    %302 = vector.shape_cast %301 : vector<1x64xf32> to vector<1x1x64xf32>
    %c0_65 = arith.constant 0 : index
    %c0_66 = arith.constant 0 : index
    %c0_67 = arith.constant 0 : index
    %303 = vector.load %arg6[%c0_65, %c0_66, %c0_67] : memref<1x1x64xf32, #tpu.memory_space<vmem>>, vector<1x1x64xf32>
    tpu.vector_store %arg6[%c0_65, %c0_66, %c0_67], %302 {strides = array<i32>} : memref<1x1x64xf32, #tpu.memory_space<vmem>>, vector<1x1x64xf32>,
    return
  }
  func.func @transform_0(%arg0: i32) -> (i32, i32, i32) {
    %c0_i32 = arith.constant 0 : i32
    %c0_i32_0 = arith.constant 0 : i32
    %c0_i32_1 = arith.constant 0 : i32
    return %arg0, %c0_i32, %c0_i32_0 : i32, i32, i32
  }
  func.func @transform_1(%arg0: i32) -> (i32, i32) {
    %c0_i32 = arith.constant 0 : i32
    %c0_i32_0 = arith.constant 0 : i32
    %c0_i32_1 = arith.constant 0 : i32
    return %c0_i32, %c0_i32_0 : i32, i32
  }
  func.func @transform_2(%arg0: i32) -> (i32, i32) {
    %c0_i32 = arith.constant 0 : i32
    %c0_i32_0 = arith.constant 0 : i32
    %c0_i32_1 = arith.constant 0 : i32
    return %c0_i32, %c0_i32_0 : i32, i32
  }
  func.func @transform_3(%arg0: i32) -> (i32, i32) {
    %c0_i32 = arith.constant 0 : i32
    %c0_i32_0 = arith.constant 0 : i32
    %c0_i32_1 = arith.constant 0 : i32
    return %c0_i32, %c0_i32_0 : i32, i32
  }
  func.func @transform_4(%arg0: i32) -> (i32, i32) {
    %c0_i32 = arith.constant 0 : i32
    %c0_i32_0 = arith.constant 0 : i32
    %c0_i32_1 = arith.constant 0 : i32
    return %c0_i32, %c0_i32_0 : i32, i32
  }
  func.func @transform_5(%arg0: i32) -> (i32, i32, i32) {
    %c0_i32 = arith.constant 0 : i32
    %c0_i32_0 = arith.constant 0 : i32
    %c0_i32_1 = arith.constant 0 : i32
    return %arg0, %c0_i32, %c0_i32_0 : i32, i32, i32
  }
}

</mosaic_0001>

<bundles_post_ra>
// kernel: tpu_custom_call.1
= control target key start
LH: loop header
LB: loop body
LE: loop exit
PB: predicated region body
PF: predicated region fallthrough
CT: control target
= control target key end

     0   :  { %10 = vsyncpa [#allocation3], 0  ;;  %s3088_s0 = inlined_call_operand.hbm [shape: f32[2,16,32], index: 0, kind: input, shape index: {}]   ;;  %s3089_s1 = inlined_call_operand.hbm [shape: f32[64,128], index: 1, kind: input, shape index: {}]   ;;  %s3090_s2 = inlined_call_operand.vmem [shape: f32[1,128], index: 2, kind: input, shape index: {}]   ;;  %s3091_s3 = inlined_call_operand.hbm [shape: f32[32,32], index: 3, kind: input, shape index: {}]   ;;  %s3092_s4 = inlined_call_operand.vmem [shape: f32[1,32], index: 4, kind: input, shape index: {}]   ;;  %s3093_s5 = inlined_call_operand.hbm [shape: f32[2,1,64], index: 5, kind: output, shape index: {}]  }
   0x1   :  { %12 = vsyncpa [#allocation3 + $0x1], 0 }
   0x2   :  { %13 = vsyncpa [#allocation6], 0 }
   0x3   :  { %14 = vsyncpa [#allocation4], 0 }
   0x4   :  { %16 = vsyncpa [#allocation4 + $0x1], 0  ;;  %s2554_s18 = smov 0   ;;  %s2556_s19 = smov 0  }
   0x5   :  { %s2558_s20 = smov 0   ;;  %s2560_s21 = smov 0  }
   0x6 LB: > { %s2575_s22 = sadd.s32 4294967295, %s2510_s21   ;;  %s1763_s23 = sadd.s32 4294967294, %s2510_s21   ;;  %s2510_s21 = sphi %s2560_s21, %s3113_s21   ;;  %s2506_s20 = sphi %s2558_s20, %s3112_s20   ;;  %s2502_s19 = sphi %s2556_s19, %s3111_s19   ;;  %s2498_s18 = sphi %s2554_s18, %s3110_s18  }
   0x7   : > { %p42_p0 = scmp.ne.s32.totalorder %s2502_s19, %s2498_s18  ;;  %p3094_p1 = scmp.eq.s32.totalorder %s2575_s22, 0 }
   0x8   : > { %p156_p3 = scmp.eq.s32.totalorder %s1763_s23, 1  ;;  %p1764_p5 = scmp.ge.s32.totalorder %s2510_s21, 1 }
   0x9   : > { %p2584_p4 = por %p3094_p1, %p42_p0  ;;  %p163_p7 = scmp.lt.s32.totalorder %s2510_s21, 3 }
   0xa   : > { %p2589_p6 = por %p156_p3, %p42_p0  ;;  %s2512_s27 = smov [#allocation5]  }
   0xb   : > { %s3097_s24 = scalar_select %p2584_p4, 1, 0 }
   0xc   : > { %s3098_s25 = scalar_select %p2589_p6, 1, 0 }
   0xd   : > { %p2594_p8 = pnand %p1764_p5, %p163_p7  ;;  %s175_s28 = sshll.u32 %s2512_s27, 4  ;;  %s2598_s28 = int_to_ptr.vmem [resolvable:$true] %s175_s28 }
   0xe   : > { %s2513_s30 = smov [#allocation7]   ;;  %s2354_s9 = scalar_lea.hbm %s3089_s1, 1024 }
   0xf   : > { %p2181_p9 = pneg %p2594_p8  ;;  %s191_s6 = sshll.u32 %s2513_s30, 4  ;;  %s2609_s6 = int_to_ptr.vmem [resolvable:$true] %s191_s6 }
  0x10   : > { %p2355_p12 = scmp.ne.s32.totalorder %s3089_s1, %s2354_s9  ;;  %p2361_p5 = scmp.lt.u32.totalorder %s2354_s9, %s3089_s1 }
  0x11   : > { %p2605_p11 = pnand %p2181_p9, %p3094_p1 }
  0x13   : > { %p2356_p13 = pneg %p2605_p11 }
  0x15   : > { %p2357_p0 = pnand %p2356_p13, %p2355_p12 }
  0x17   : > { %p2358_p3 = pneg %p2357_p0 }
  0x19   : > { %p2363_p7 = pnand %p2361_p5, %p2358_p3 }
  0x1b   : > { %2366 = shalt.err (!%p2363_p7)
}
  0x1c   : > { %s2367_s14 = scalar_lea.vmem %s2598_s28, 1024  ;;  %p2375_p2 = scmp.lt.s32.totalorder %s2598_s28, %s2598_s28 }
  0x1d   : > { %p2368_p9 = scmp.ne.s32.totalorder %s2598_s28, %s2367_s14  ;;  %p2376_p12 = scmp.lt.s32.totalorder %s2367_s14, %s2367_s14 }
  0x1f   : > { %p2370_p10 = pnand %p2368_p9, %p2356_p13  ;;  %p2377_p0 = por %p2376_p12, %p2375_p2 }
  0x21   : > { %p2371_p1 = pneg %p2370_p10 }
  0x23   : > { %p2378_p6 = pnand %p2377_p0, %p2371_p1 }
  0x25   : > { %2381 = shalt.err (!%p2378_p6)
}
  0x26   : > { %s2514_s15 = smov 128   ;;  %s2515_s16 = smov 8  }
  0x27   : > { %2184 = dma.hbm_to_vmem [thread:$0]  (!%p2605_p11), %s3089_s1, 1024, %s2598_s28, [#allocation6], %s2514_s15, %s2514_s15, %s2515_s16  }
  0x28   : > { %s2382_s7 = scalar_lea.hbm %s3091_s3, 512 }
  0x29   : > { %p2383_p1 = scmp.ne.s32.totalorder %s3091_s3, %s2382_s7  ;;  %p2389_p10 = scmp.lt.u32.totalorder %s2382_s7, %s3091_s3 }
  0x2b   : > { %p2385_p2 = pnand %p2383_p1, %p2356_p13 }
  0x2d   : > { %p2386_p6 = pneg %p2385_p2 }
  0x2f   : > { %p2391_p3 = pnand %p2389_p10, %p2386_p6 }
  0x31   : > { %2394 = shalt.err (!%p2391_p3)
}
  0x32   : > { %s2395_s28 = scalar_lea.vmem %s2609_s6, 512  ;;  %p2403_p12 = scmp.lt.s32.totalorder %s2609_s6, %s2609_s6 }
  0x33   : > { %p2396_p5 = scmp.ne.s32.totalorder %s2609_s6, %s2395_s28  ;;  %p2404_p0 = scmp.lt.s32.totalorder %s2395_s28, %s2395_s28 }
  0x35   : > { %p2398_p7 = pnand %p2396_p5, %p2356_p13  ;;  %p2405_p1 = por %p2404_p0, %p2403_p12 }
  0x37   : > { %p2399_p9 = pneg %p2398_p7 }
  0x39   : > { %p2406_p2 = pnand %p2405_p1, %p2399_p9 }
  0x3b   : > { %2409 = shalt.err (!%p2406_p2)
}
  0x3c   : > { %2187 = dma.hbm_to_vmem [thread:$0]  (!%p2605_p11), %s3091_s3, 512, %s2609_s6, [#allocation6], %s2514_s15, %s2514_s15, %s2515_s16  }
  0x3d   : > { %s2670_s29 = sadd.s32 1, %s2510_s21   ;;  %s29_s14 = sadd.s32 1, %s2506_s20 }
  0x3e   : > { %s26_s17 = ssub.s32 %s2510_s21, %s2670_s29  ;;  %p36_p13 = scmp.ne.s32.totalorder %s2506_s20, %s2502_s19 }
  0x3f   : > { %p27_p6 = scmp.eq.s32.totalorder %s26_s17, 0  ;;  %p37_p10 = scmp.eq.s32.totalorder %s2510_s21, 0 }
  0x40   : > { %p3101_p3 = scmp.eq.s32.totalorder %s2575_s22, 1  ;;  %p2198_p7 = scmp.lt.s32.totalorder %s2510_s21, 2 }
  0x41   : > { %s2686_s27 = scalar_select %p27_p6, %s2506_s20, %s29_s14  }
  0x42   : > { %p2680_p5 = por %p3101_p3, %p36_p13  ;;  %p38_p9 = por %p37_p10, %p36_p13 }
  0x43   : > { %s208_s30 = sand.u32 1, %s2506_s20   ;;  %s1796_s6 = sshll.u32 %s2510_s21, 8 }
  0x44   : > { %s3102_s23 = scalar_select %p2680_p5, 1, 0 }
  0x45   : > { %s1768_s7 = sshll.u32 %s208_s30, 4  ;;  %s2693_s10 = scalar_lea.hbm %s3088_s0, %s1796_s6 }
  0x46   : > { %s212_s11 = scalar_lea.vmem [#allocation2], %s1768_s7  ;;  %p2697_p11 = pnand %p2198_p7, %p38_p9 }
  0x47   : > { %s219_s28 = sshll.u32 %s212_s11, 4  ;;  %s2701_s13 = scalar_lea.sflag [#allocation3], %s208_s30  ;;  %s2695_s28 = int_to_ptr.vmem [resolvable:$true] %s219_s28 }
  0x48   : > { %s2410_s14 = scalar_lea.hbm %s2693_s10, 256  ;;  %p2412_p0 = pneg %p2697_p11 }
  0x49   : > { %p2411_p12 = scmp.ne.s32.totalorder %s2693_s10, %s2410_s14  ;;  %s2415_s6 = scalar_lea.hbm %s3088_s0, 512 }
  0x4a   : > { %p2416_p13 = scmp.lt.u32.totalorder %s2693_s10, %s3088_s0  ;;  %p2417_p6 = scmp.lt.u32.totalorder %s2415_s6, %s2410_s14 }
  0x4b   : > { %p2413_p1 = pnand %p2412_p0, %p2411_p12  ;;  %p2419_p3 = scmp.lt.u32.totalorder %s2410_s14, %s2693_s10 }
  0x4c   : > { %p2418_p10 = por %p2417_p6, %p2416_p13 }
  0x4d   : > { %p2414_p2 = pneg %p2413_p1 }
  0x4e   : > { %p2420_p7 = por %p2419_p3, %p2418_p10 }
  0x50   : > { %p2421_p9 = pnand %p2420_p7, %p2414_p2 }
  0x52   : > { %2424 = shalt.err (!%p2421_p9)
}
  0x53   : > { %s2425_s30 = scalar_lea.vmem %s2695_s28, 256  ;;  %s2516_s11 = smov [#allocation2]  }
  0x54   : > { %p2426_p12 = scmp.ne.s32.totalorder %s2695_s28, %s2425_s30  ;;  %s2430_s17 = sshll.u32 %s2516_s11, 4  ;;  %s2431_s17 = int_to_ptr.vmem [resolvable:$false] %s2430_s17 }
  0x55   : > { %s2432_s7 = scalar_lea.vmem %s2431_s17, 512  ;;  %p2433_p4 = scmp.lt.s32.totalorder %s2695_s28, %s2431_s17 }
  0x56   : > { %p2428_p1 = pnand %p2426_p12, %p2412_p0  ;;  %p2434_p13 = scmp.lt.s32.totalorder %s2432_s7, %s2425_s30 }
  0x58   : > { %p2429_p5 = pneg %p2428_p1  ;;  %p2435_p6 = por %p2434_p13, %p2433_p4 }
  0x5a   : > { %p2436_p10 = pnand %p2435_p6, %p2429_p5 }
  0x5c   : > { %2439 = shalt.err (!%p2436_p10)
}
  0x5d   : > { %2191 = dma.hbm_to_vmem [thread:$0]  (!%p2697_p11), %s2693_s10, 256, %s2695_s28, %s2701_s13, %s2514_s15, %s2514_s15, %s2515_s16  }
  0x5e   : > { %231 = sbr.rel (%p2594_p8) target bundleno = 7727 (0x1e2f), region = 40  ;;  %s2735_s14 = sand.u32 (!%p2594_p8), 1, %s2502_s19  }
  0x5f   : > { %s1772_s6 = sshll.u32 (!%p2594_p8), %s2735_s14, 4  ;;  %s234_s8 = scalar_lea.sflag (!%p2594_p8), [#allocation3], %s2735_s14 }
  0x60   : > { %s2739_s9 = scalar_lea.vmem (!%p2594_p8), [#allocation2], %s1772_s6  ;;  %p3104_p4 = scmp.ne.s32.totalorder (!%p2594_p8), %s3097_s24, 0 }
  0x65   : > { %2485 = dma.done.wait (%p3104_p4), %s234_s8, 256  }
  0x66   : > { %2487 = vsyncadd (%p3104_p4), %s234_s8, 4294967040  ;;  %p3105_p5 = scmp.eq.s32.totalorder %s2575_s22, 0 }
  0x68   : > { %2489 = dma.done.wait (%p3105_p5), [#allocation6], 1536   ;;  %p3106_p8 = pmov %p3105_p5 }
  0x69   : > { %v2517_v0 = vmov 0.0|0.0   ;;  %vm2518_vm0 = vmmov 0   ;;  %v2519_v1 = vmov 0.0   ;;  %v273_v2 = vld [vmem:[#allocation5] sm:$0xff]  ;;  %v274_v3 = vld [vmem:[#allocation5 + $0x8] sm:$0xff]  ;;  %v275_v4 = vld [vmem:[#allocation5 + $0x10] sm:$0xff]  ;;  %v461_v38 = vlaneseq }
  0x6a   : > { %2491 = vsyncadd (%p3106_p8), [#allocation6], 4294965760  ;;  %2061 = vmatprep.subr.bf16.mxu0 %v2517_v0  ;;  %1897 = vmatprep.mubr.msk.f32.mxu0 %vm2518_vm0, %v2519_v1  ;;  %v2755_v5 = vpack.c.bf16 %v274_v3, %v273_v2  ;;  %v276_v6 = vld [vmem:[#allocation5 + $0x18] sm:$0xff]  ;;  %v277_v8 = vld [vmem:[#allocation5 + $0x20] sm:$0xff]  ;;  %s2520_s15 = smov 64   ;;  %s2521_s16 = smov 96  }
  0x6b   : > { %2073 = vmatprep.subr.bf16.mxu1 %v2517_v0  ;;  %1908 = vmatprep.mubr.msk.f32.mxu1 %vm2518_vm0, %v2519_v1  ;;  %v2758_v7 = vpack.c.bf16 %v276_v6, %v275_v4  ;;  %v278_v9 = vld [vmem:[#allocation5 + $0x28] sm:$0xff]  ;;  %v279_v11 = vld [vmem:[#allocation5 + $0x30] sm:$0xff]  ;;  %v280_v12 = vld [vmem:[#allocation5 + $0x38] sm:$0xff]  ;;  %vm388_vm1 = vcmask 261120   ;;  %v462_v39 = vshrl.u32 %v461_v38, 7  ;;  %s2522_s12 = smov 32  }
  0x6c   : > { %2063 = vmatpush3.bf16.msra.mxu0 %v2755_v5  ;;  %v2762_v10 = vpack.c.bf16 %v278_v9, %v277_v8  ;;  %v2766_v13 = vpack.c.bf16 %v280_v12, %v279_v11  ;;  %v2777_v14 = vld [vmem:[%s3090_s2] sm:$0x1]  ;;  %v283_v29 = vld [vmem:[#allocation7 + $0x8] sm:$0xff]  ;;  %v284_v30 = vld [vmem:[#allocation7 + $0x10] sm:$0xff]  ;;  %vm287_vm2 = vcmask 523264   ;;  %s1793_s13 = sshll.u32 %s2575_s22, 4 }
  0x6d   : > { %2064 = vmatprep.subr.bf16.mxu0 %v2517_v0  ;;  %v282_v28 = vld [vmem:[#allocation7] sm:$0xff]  ;;  %v285_v32 = vld [vmem:[#allocation7 + $0x18] sm:$0xff]  ;;  %v2813_v40 = vsub.s32 0, %v462_v39  ;;  %s270_s30 = scalar_lea.vmem [#allocation8], %s2735_s14  ;;  %vm1663_vm3 = vcmask 516096   ;;  %s3042_s6 = scalar_lea.hbm %s3093_s5, %s1793_s13 }
  0x6e   : > { %v2785_v31 = vpack.c.bf16 %v283_v29, %v282_v28  ;;  %v2788_v33 = vpack.c.bf16 %v285_v32, %v284_v30  ;;  %v2816_v41 = vld [vmem:[%s2739_s9] sm:$0xff]  ;;  %v2819_v42 = vld [vmem:[%s2739_s9 + $0x8] sm:$0xff]  ;;  %s1678_s11 = sshll.u32 %s270_s30, 4  ;;  %s1666_s8 = scalar_lea.sflag [#allocation4], %s2735_s14  ;;  %s3044_s11 = int_to_ptr.vmem [resolvable:$true] %s1678_s11 }
  0x6f   : > { %v2827_v48 = vld [vmem:[%s3092_s4] ss:$0 sm:$0xff]  ;;  %s2440_s22 = scalar_lea.vmem %s3044_s11, 16  ;;  %p3107_p0 = scmp.ne.s32.totalorder %s3102_s23, 0 }
  0x70   : > { %2066 = vmatpush3.bf16.msra.mxu0 %v2758_v7  ;;  %2075 = vmatpush3.bf16.msra.mxu1 %v2785_v31  ;;  %p2441_p11 = scmp.ne.s32.totalorder %s3044_s11, %s2440_s22 }
  0x71   : > { %2067 = vmatprep.subr.bf16.mxu0 %v2517_v0  ;;  %2076 = vmatprep.subr.bf16.mxu1 %v2517_v0 }
  0x72   : > { %p2442_p2 = pnand %p2441_p11, %p3107_p0 }
  0x74   : > { %2069 = vmatpush3.bf16.msra.mxu0 %v2762_v10  ;;  %2078 = vmatpush3.bf16.msra.mxu1 %v2788_v33  ;;  %p2443_p3 = pneg %p2442_p2 }
  0x75   : > { %2070 = vmatprep.subr.bf16.mxu0 %v2517_v0  ;;  %2079 = vmatprep.subr.bf16.mxu1 %v2517_v0 }
  0x78   : > { %2072 = vmatpush3.bf16.msra.mxu0 %v2766_v13 }
  0x79   : > { %2091 = vmatprep.subr.bf16.mxu0 %v2517_v0 }
  0x7b   : > { %1898 = vmatmul.mubr.f32.vlgmr.msra.gmra.mrb[0].mxu0 %v2519_v1 }
  0x7c   : > { %1938 = vmatprep.mubr.msk.f32.mxu0 %vm2518_vm0, %v2519_v1  ;;  %2093 = vmatpush3.bf16.msra.mxu0 %v2785_v31 }
  0x7d   : > { %2094 = vmatprep.subr.bf16.mxu0 %v2517_v0 }
  0x80   : > { %2096 = vmatpush3.bf16.msra.mxu0 %v2788_v33 }
  0x81   : > { %2097 = vmatprep.subr.bf16.mxu0 %v2517_v0 }
 0x14e   : > { %v357_v15 = vpop.f32.mrb[0].mxu0 }
 0x14f   : > { %v358_v16 = vadd.f32 %v357_v15, %v2777_v14  ;;  %v1899_v17 = vpop.f32.mrb[1].mxu0 }
 0x151   : > { %2244 = vtanh.f32 %v358_v16  ;;  %v1775_v19 = vmul.f32 -1.442695, %v358_v16 }
 0x153   : > { %2246 = vpow2.f32 %v1775_v19 }
 0x15b   : > { %v2245_v18 = vpop.eup %2244 }
 0x15c   : > { %370 = vrot.lane.b32.xlu0 %v2245_v18, %s2520_s15 }
 0x15d   : > { %v2247_v20 = vpop.eup %2246 }
 0x15e   : > { %v364_v21 = vadd.f32 1.0, %v2247_v20 }
 0x160   : > { %2248 = vrcp.f32 %v364_v21 }
 0x16a   : > { %v2249_v22 = vpop.eup %2248 }
 0x16b   : > { %v368_v25 = vmul.f32 0.0, %v2249_v22 }
 0x1ce   : > { %v371_v23 = vpop.permute.xlu0 %370 }
 0x1cf   : > { %v373_v24 = vmul.f32 %v2249_v22, %v371_v23 }
 0x1d1   : > { %375 = vrot.lane.b32.xlu0 %v373_v24, %s2521_s16 }
 0x243   : > { %v376_v26 = vpop.permute.xlu0 %375 }
 0x244   : > { %v2782_v27 = vadd.f32 %v376_v26, %v368_v25 }
 0x246   : > { %2250 = vtanh.f32 %v2782_v27 }
 0x250   : > { %v2251_v34 = vpop.eup %2250 }
 0x251   : > { %381 = vrot.lane.b32.xlu1 %v2251_v34, %s2520_s15 }
 0x2c3   : > { %v382_v35 = vpop.permute.xlu1 %381 }
 0x2c4   : > { %v384_v36 = vmul.f32 %v2249_v22, %v382_v35 }
 0x2c6   : > { %386 = vrot.lane.b32.xlu1 %v384_v36, %s2520_s15 }
 0x338   : > { %v2799_v37 = vpop.permute.xlu1 %386 }
 0x339   : > { %1909 = vmatmul.mubr.msk.f32.vlgmr.msra.gmra.mrb[0].mxu1 %vm388_vm1, %v2799_v37 }
 0x33a   : > { %2081 = vmatpush3.bf16.msra.mxu1 %v2755_v5  ;;  %1927 = vmatprep.mubr.msk.f32.mxu1 %vm2518_vm0, %v2519_v1 }
 0x33b   : > { %2082 = vmatprep.subr.bf16.mxu1 %v2517_v0 }
 0x33e   : > { %2084 = vmatpush3.bf16.msra.mxu1 %v2758_v7 }
 0x33f   : > { %2085 = vmatprep.subr.bf16.mxu1 %v2517_v0 }
 0x342   : > { %2087 = vmatpush3.bf16.msra.mxu1 %v2762_v10 }
 0x343   : > { %2088 = vmatprep.subr.bf16.mxu1 %v2517_v0 }
 0x346   : > { %2090 = vmatpush3.bf16.msra.mxu1 %v2766_v13 }
 0x347   : > { %2109 = vmatprep.subr.bf16.mxu1 %v2517_v0 }
 0x40c   : > { %v457_v43 = vpop.f32.mrb[0].mxu1 }
 0x40d   : > { %v464_v44 = vrot.slane %v457_v43, %v2813_v40  ;;  %v1910_v45 = vpop.f32.mrb[1].mxu1 }
 0x40f   : > { %v465_v46 = vadd.f32 %v464_v44, %v2816_v41  ;;  %v466_v47 = vadd.f32 %v464_v44, %v2819_v42 }
 0x411   : > { %2252 = vtanh.f32 %v465_v46 }
 0x412   : > { %2254 = vtanh.f32 %v466_v47 }
 0x41b   : > { %v2253_v49 = vpop.eup %2252 }
 0x41c   : > { %v2255_v50 = vpop.eup %2254  ;;  %v475_v51 = vmul.f32 %v2253_v49, %v2827_v48 }
 0x41d   : > { %v476_v52 = vmul.f32 %v2255_v50, %v2827_v48 }
 0x41e   : > { %v477_v53 = vsel %vm388_vm1, %v475_v51, 0.0 }
 0x41f   : > { %v480_v54 = vsel %vm388_vm1, %v476_v52, 0.0  ;;  %478 = vadd.xlane.f32.xlu0 %v477_v53 }
 0x420   : > { %481 = vadd.xlane.f32.xlu1 %v480_v54 }
 0x4ac   : > { %v479_v55 = vpop.xlane.xlu0 %478 }
 0x4ad   : > { %v482_v56 = vpop.xlane.xlu1 %481 }
 0x4ae   : > { %v483_v57 = vmax.f32 %v479_v55, %v482_v56 }
 0x4b0   : > { %v484_v58 = vrot.slane %v483_v57, 4 }
 0x4b2   : > { %v485_v59 = vmax.f32 %v483_v57, %v484_v58 }
 0x4b4   : > { %v486_v60 = vrot.slane %v485_v59, 2 }
 0x4b6   : > { %v487_v61 = vmax.f32 %v485_v59, %v486_v60 }
 0x4b8   : > { %v488_v62 = vrot.slane %v487_v61, 1 }
 0x4ba   : > { %v489_v63 = vmax.f32 %v487_v61, %v488_v62 }
 0x4bc   : > { %v490_v2 = vsub.f32 %v479_v55, %v489_v63  ;;  %v491_v3 = vsub.f32 %v482_v56, %v489_v63 }
 0x4be   : > { %v492_v4 = vmul.f32 1.442695, %v490_v2  ;;  %v494_v6 = vmul.f32 1.442695, %v491_v3 }
 0x4c0   : > { %2256 = vpow2.f32 %v492_v4 }
 0x4c1   : > { %2258 = vpow2.f32 %v494_v6 }
 0x4ca   : > { %v2257_v8 = vpop.eup %2256 }
 0x4cb   : > { %v2259_v9 = vpop.eup %2258 }
 0x4cc   : > { %v496_v11 = vadd.f32 %v2259_v9, %v2257_v8 }
 0x4ce   : > { %v497_v12 = vrot.slane %v496_v11, 4 }
 0x4d0   : > { %v498_v15 = vadd.f32 %v497_v12, %v496_v11 }
 0x4d2   : > { %v499_v16 = vrot.slane %v498_v15, 2 }
 0x4d4   : > { %v500_v17 = vadd.f32 %v499_v16, %v498_v15 }
 0x4d6   : > { %v501_v18 = vrot.slane %v500_v17, 1 }
 0x4d8   : > { %v502_v19 = vadd.f32 %v501_v18, %v500_v17 }
 0x4da   : > { %2260 = vrcp.f32 %v502_v19 }
 0x4e4   : > { %v2261_v20 = vpop.eup %2260 }
 0x4e5   : > { %v504_v21 = vmul.f32 %v2261_v20, %v2257_v8  ;;  %v505_v22 = vmul.f32 %v2261_v20, %v2259_v9 }
 0x4e7   : > { %v506_v23 = vmul.f32 %v504_v21, %v2816_v41  ;;  %v507_v24 = vmul.f32 %v505_v22, %v2819_v42 }
 0x4e9   : > { %v508_v25 = vsel %vm388_vm1, %v506_v23, 0.0  ;;  %v509_v26 = vsel %vm388_vm1, %v507_v24, 0.0 }
 0x4ea   : > { %v510_v28 = vadd.f32 %v509_v26, %v508_v25 }
 0x4ec   : > { %v511_v29 = vrot.slane %v510_v28, 4 }
 0x4ee   : > { %v512_v30 = vadd.f32 %v511_v29, %v510_v28 }
 0x4f0   : > { %v513_v32 = vrot.slane %v512_v30, 2 }
 0x4f2   : > { %v514_v34 = vadd.f32 %v513_v32, %v512_v30 }
 0x4f4   : > { %v515_v35 = vrot.slane %v514_v34, 1 }
 0x4f6   : > { %v516_v36 = vadd.f32 %v515_v35, %v514_v34 }
 0x4f8   : > { %519 = vrot.lane.b32.xlu0 %v516_v36, %s2522_s12 }
 0x56a   : > { %v520_v38 = vpop.permute.xlu0 %519 }
 0x56b   : > { %v522_v39 = vsel %vm388_vm1, %v2799_v37, %v520_v38 }
 0x56c   : > { %1928 = vmatmul.mubr.msk.f32.vlgmr.msra.gmra.mrb[2].mxu1 %vm287_vm2, %v522_v39 }
 0x56d   : > { %2111 = vmatpush3.bf16.msra.mxu1 %v2785_v31  ;;  %1968 = vmatprep.mubr.msk.f32.mxu1 %vm2518_vm0, %v2519_v1 }
 0x56e   : > { %2112 = vmatprep.subr.bf16.mxu1 %v2517_v0 }
 0x571   : > { %2114 = vmatpush3.bf16.msra.mxu1 %v2788_v33 }
 0x572   : > { %2115 = vmatprep.subr.bf16.mxu1 %v2517_v0 }
 0x63f   : > { %v592_v43 = vpop.f32.mrb[2].mxu1 }
 0x640   : > { %v593_v44 = vadd.f32 %v592_v43, %v2777_v14  ;;  %v1929_v45 = vpop.f32.mrb[3].mxu1 }
 0x642   : > { %2262 = vtanh.f32 %v593_v44  ;;  %v1779_v37 = vmul.f32 -1.442695, %v593_v44 }
 0x644   : > { %2264 = vpow2.f32 %v1779_v37 }
 0x64c   : > { %v2263_v46 = vpop.eup %2262 }
 0x64d   : > { %605 = vrot.lane.b32.xlu1 %v2263_v46, %s2520_s15 }
 0x64e   : > { %v2265_v47 = vpop.eup %2264 }
 0x64f   : > { %v599_v49 = vadd.f32 1.0, %v2265_v47 }
 0x651   : > { %2266 = vrcp.f32 %v599_v49 }
 0x65b   : > { %v2267_v50 = vpop.eup %2266 }
 0x65c   : > { %v603_v53 = vmul.f32 %v2267_v50, %v2782_v27 }
 0x6bf   : > { %v606_v51 = vpop.permute.xlu1 %605 }
 0x6c0   : > { %v608_v52 = vmul.f32 %v2267_v50, %v606_v51 }
 0x6c2   : > { %610 = vrot.lane.b32.xlu0 %v608_v52, %s2521_s16 }
 0x734   : > { %v611_v54 = vpop.permute.xlu0 %610 }
 0x735   : > { %v2851_v55 = vadd.f32 %v611_v54, %v603_v53 }
 0x737   : > { %2268 = vtanh.f32 %v2851_v55 }
 0x741   : > { %v2269_v56 = vpop.eup %2268 }
 0x742   : > { %616 = vrot.lane.b32.xlu1 %v2269_v56, %s2520_s15 }
 0x7b4   : > { %v617_v57 = vpop.permute.xlu1 %616 }
 0x7b5   : > { %v619_v58 = vmul.f32 %v2267_v50, %v617_v57 }
 0x7b7   : > { %621 = vrot.lane.b32.xlu0 %v619_v58, %s2520_s15 }
 0x829   : > { %v2856_v59 = vpop.permute.xlu0 %621 }
 0x82a   : > { %1939 = vmatmul.mubr.msk.f32.vlgmr.msra.gmra.mrb[2].mxu0 %vm388_vm1, %v2856_v59 }
 0x82b   : > { %2099 = vmatpush3.bf16.msra.mxu0 %v2755_v5  ;;  %1957 = vmatprep.mubr.msk.f32.mxu0 %vm2518_vm0, %v2519_v1 }
 0x82c   : > { %2100 = vmatprep.subr.bf16.mxu0 %v2517_v0 }
 0x82f   : > { %2102 = vmatpush3.bf16.msra.mxu0 %v2758_v7 }
 0x830   : > { %2103 = vmatprep.subr.bf16.mxu0 %v2517_v0 }
 0x833   : > { %2105 = vmatpush3.bf16.msra.mxu0 %v2762_v10 }
 0x834   : > { %2106 = vmatprep.subr.bf16.mxu0 %v2517_v0 }
 0x837   : > { %2108 = vmatpush3.bf16.msra.mxu0 %v2766_v13 }
 0x838   : > { %2127 = vmatprep.subr.bf16.mxu0 %v2517_v0 }
 0x8fd   : > { %v691_v27 = vpop.f32.mrb[2].mxu0 }
 0x8fe   : > { %v698_v60 = vrot.slane %v691_v27, %v2813_v40  ;;  %v1940_v61 = vpop.f32.mrb[3].mxu0 }
 0x900   : > { %v699_v62 = vadd.f32 %v698_v60, %v2816_v41  ;;  %v700_v63 = vadd.f32 %v698_v60, %v2819_v42 }
 0x902   : > { %2270 = vtanh.f32 %v699_v62 }
 0x903   : > { %2272 = vtanh.f32 %v700_v63 }
 0x90c   : > { %v2271_v2 = vpop.eup %2270 }
 0x90d   : > { %v2273_v3 = vpop.eup %2272  ;;  %v703_v4 = vmul.f32 %v2271_v2, %v2827_v48 }
 0x90e   : > { %v704_v6 = vmul.f32 %v2273_v3, %v2827_v48 }
 0x90f   : > { %v705_v8 = vsel %vm388_vm1, %v703_v4, 0.0 }
 0x910   : > { %v708_v9 = vsel %vm388_vm1, %v704_v6, 0.0  ;;  %706 = vadd.xlane.f32.xlu1 %v705_v8 }
 0x911   : > { %709 = vadd.xlane.f32.xlu0 %v708_v9 }
 0x99d   : > { %v707_v11 = vpop.xlane.xlu1 %706 }
 0x99e   : > { %v710_v12 = vpop.xlane.xlu0 %709 }
 0x99f   : > { %v711_v15 = vmax.f32 %v707_v11, %v710_v12 }
 0x9a1   : > { %v712_v16 = vrot.slane %v711_v15, 4 }
 0x9a3   : > { %v713_v17 = vmax.f32 %v711_v15, %v712_v16 }
 0x9a5   : > { %v714_v18 = vrot.slane %v713_v17, 2 }
 0x9a7   : > { %v715_v19 = vmax.f32 %v713_v17, %v714_v18 }
 0x9a9   : > { %v716_v20 = vrot.slane %v715_v19, 1 }
 0x9ab   : > { %v717_v21 = vmax.f32 %v715_v19, %v716_v20 }
 0x9ad   : > { %v718_v22 = vsub.f32 %v707_v11, %v717_v21  ;;  %v719_v23 = vsub.f32 %v710_v12, %v717_v21 }
 0x9af   : > { %v720_v24 = vmul.f32 1.442695, %v718_v22  ;;  %v722_v25 = vmul.f32 1.442695, %v719_v23 }
 0x9b1   : > { %2274 = vpow2.f32 %v720_v24 }
 0x9b2   : > { %2276 = vpow2.f32 %v722_v25 }
 0x9bb   : > { %v2275_v26 = vpop.eup %2274 }
 0x9bc   : > { %v2277_v28 = vpop.eup %2276 }
 0x9bd   : > { %v724_v29 = vadd.f32 %v2277_v28, %v2275_v26 }
 0x9bf   : > { %v725_v30 = vrot.slane %v724_v29, 4 }
 0x9c1   : > { %v726_v32 = vadd.f32 %v725_v30, %v724_v29 }
 0x9c3   : > { %v727_v34 = vrot.slane %v726_v32, 2 }
 0x9c5   : > { %v728_v35 = vadd.f32 %v727_v34, %v726_v32 }
 0x9c7   : > { %v729_v36 = vrot.slane %v728_v35, 1 }
 0x9c9   : > { %v730_v38 = vadd.f32 %v729_v36, %v728_v35 }
 0x9cb   : > { %2278 = vrcp.f32 %v730_v38 }
 0x9d5   : > { %v2279_v39 = vpop.eup %2278 }
 0x9d6   : > { %v732_v43 = vmul.f32 %v2279_v39, %v2275_v26  ;;  %v733_v44 = vmul.f32 %v2279_v39, %v2277_v28 }
 0x9d8   : > { %v734_v45 = vmul.f32 %v732_v43, %v2816_v41  ;;  %v735_v46 = vmul.f32 %v733_v44, %v2819_v42 }
 0x9da   : > { %v736_v37 = vsel %vm388_vm1, %v734_v45, 0.0  ;;  %v737_v47 = vsel %vm388_vm1, %v735_v46, 0.0 }
 0x9db   : > { %v738_v49 = vadd.f32 %v737_v47, %v736_v37 }
 0x9dd   : > { %v739_v50 = vrot.slane %v738_v49, 4 }
 0x9df   : > { %v740_v51 = vadd.f32 %v739_v50, %v738_v49 }
 0x9e1   : > { %v741_v52 = vrot.slane %v740_v51, 2 }
 0x9e3   : > { %v742_v53 = vadd.f32 %v741_v52, %v740_v51 }
 0x9e5   : > { %v743_v54 = vrot.slane %v742_v53, 1 }
 0x9e7   : > { %v744_v56 = vadd.f32 %v743_v54, %v742_v53 }
 0x9e9   : > { %747 = vrot.lane.b32.xlu0 %v744_v56, %s2522_s12 }
 0xa5b   : > { %v748_v57 = vpop.permute.xlu0 %747 }
 0xa5c   : > { %v750_v58 = vsel %vm388_vm1, %v2856_v59, %v748_v57 }
 0xa5d   : > { %1958 = vmatmul.mubr.msk.f32.vlgmr.msra.gmra.mrb[4].mxu0 %vm287_vm2, %v750_v58 }
 0xa5e   : > { %2129 = vmatpush3.bf16.msra.mxu0 %v2785_v31  ;;  %1998 = vmatprep.mubr.msk.f32.mxu0 %vm2518_vm0, %v2519_v1 }
 0xa5f   : > { %2130 = vmatprep.subr.bf16.mxu0 %v2517_v0 }
 0xa62   : > { %2132 = vmatpush3.bf16.msra.mxu0 %v2788_v33 }
 0xa63   : > { %2133 = vmatprep.subr.bf16.mxu0 %v2517_v0 }
 0xb30   : > { %v820_v27 = vpop.f32.mrb[4].mxu0 }
 0xb31   : > { %v821_v60 = vadd.f32 %v820_v27, %v2777_v14  ;;  %v1959_v61 = vpop.f32.mrb[5].mxu0 }
 0xb33   : > { %2280 = vtanh.f32 %v821_v60  ;;  %v1782_v59 = vmul.f32 -1.442695, %v821_v60 }
 0xb35   : > { %2282 = vpow2.f32 %v1782_v59 }
 0xb3d   : > { %v2281_v62 = vpop.eup %2280 }
 0xb3e   : > { %833 = vrot.lane.b32.xlu1 %v2281_v62, %s2520_s15 }
 0xb3f   : > { %v2283_v63 = vpop.eup %2282 }
 0xb40   : > { %v827_v2 = vadd.f32 1.0, %v2283_v63 }
 0xb42   : > { %2284 = vrcp.f32 %v827_v2 }
 0xb4c   : > { %v2285_v3 = vpop.eup %2284 }
 0xb4d   : > { %v831_v8 = vmul.f32 %v2285_v3, %v2851_v55 }
 0xbb0   : > { %v834_v4 = vpop.permute.xlu1 %833 }
 0xbb1   : > { %v836_v6 = vmul.f32 %v2285_v3, %v834_v4 }
 0xbb3   : > { %838 = vrot.lane.b32.xlu1 %v836_v6, %s2521_s16 }
 0xc25   : > { %v839_v9 = vpop.permute.xlu1 %838 }
 0xc26   : > { %v2895_v11 = vadd.f32 %v839_v9, %v831_v8 }
 0xc28   : > { %2286 = vtanh.f32 %v2895_v11 }
 0xc32   : > { %v2287_v12 = vpop.eup %2286 }
 0xc33   : > { %844 = vrot.lane.b32.xlu0 %v2287_v12, %s2520_s15 }
 0xca5   : > { %v845_v15 = vpop.permute.xlu0 %844 }
 0xca6   : > { %v847_v16 = vmul.f32 %v2285_v3, %v845_v15 }
 0xca8   : > { %849 = vrot.lane.b32.xlu1 %v847_v16, %s2520_s15 }
 0xd1a   : > { %v2900_v17 = vpop.permute.xlu1 %849 }
 0xd1b   : > { %1969 = vmatmul.mubr.msk.f32.vlgmr.msra.gmra.mrb[4].mxu1 %vm388_vm1, %v2900_v17 }
 0xd1c   : > { %2117 = vmatpush3.bf16.msra.mxu1 %v2755_v5  ;;  %1987 = vmatprep.mubr.msk.f32.mxu1 %vm2518_vm0, %v2519_v1 }
 0xd1d   : > { %2118 = vmatprep.subr.bf16.mxu1 %v2517_v0 }
 0xd20   : > { %2120 = vmatpush3.bf16.msra.mxu1 %v2758_v7 }
 0xd21   : > { %2121 = vmatprep.subr.bf16.mxu1 %v2517_v0 }
 0xd24   : > { %2123 = vmatpush3.bf16.msra.mxu1 %v2762_v10 }
 0xd25   : > { %2124 = vmatprep.subr.bf16.mxu1 %v2517_v0 }
 0xd28   : > { %2126 = vmatpush3.bf16.msra.mxu1 %v2766_v13 }
 0xd29   : > { %2145 = vmatprep.subr.bf16.mxu1 %v2517_v0 }
 0xdee   : > { %v919_v55 = vpop.f32.mrb[4].mxu1 }
 0xdef   : > { %v926_v18 = vrot.slane %v919_v55, %v2813_v40  ;;  %v1970_v19 = vpop.f32.mrb[5].mxu1 }
 0xdf1   : > { %v927_v20 = vadd.f32 %v926_v18, %v2816_v41  ;;  %v928_v21 = vadd.f32 %v926_v18, %v2819_v42 }
 0xdf3   : > { %2288 = vtanh.f32 %v927_v20 }
 0xdf4   : > { %2290 = vtanh.f32 %v928_v21 }
 0xdfd   : > { %v2289_v22 = vpop.eup %2288 }
 0xdfe   : > { %v2291_v23 = vpop.eup %2290  ;;  %v931_v24 = vmul.f32 %v2289_v22, %v2827_v48 }
 0xdff   : > { %v932_v25 = vmul.f32 %v2291_v23, %v2827_v48 }
 0xe00   : > { %v933_v26 = vsel %vm388_vm1, %v931_v24, 0.0 }
 0xe01   : > { %v936_v28 = vsel %vm388_vm1, %v932_v25, 0.0  ;;  %934 = vadd.xlane.f32.xlu0 %v933_v26 }
 0xe02   : > { %937 = vadd.xlane.f32.xlu1 %v936_v28 }
 0xe8e   : > { %v935_v29 = vpop.xlane.xlu0 %934 }
 0xe8f   : > { %v938_v30 = vpop.xlane.xlu1 %937 }
 0xe90   : > { %v939_v32 = vmax.f32 %v935_v29, %v938_v30 }
 0xe92   : > { %v940_v34 = vrot.slane %v939_v32, 4 }
 0xe94   : > { %v941_v35 = vmax.f32 %v939_v32, %v940_v34 }
 0xe96   : > { %v942_v36 = vrot.slane %v941_v35, 2 }
 0xe98   : > { %v943_v38 = vmax.f32 %v941_v35, %v942_v36 }
 0xe9a   : > { %v944_v39 = vrot.slane %v943_v38, 1 }
 0xe9c   : > { %v945_v43 = vmax.f32 %v943_v38, %v944_v39 }
 0xe9e   : > { %v946_v44 = vsub.f32 %v935_v29, %v945_v43  ;;  %v947_v45 = vsub.f32 %v938_v30, %v945_v43 }
 0xea0   : > { %v948_v46 = vmul.f32 1.442695, %v946_v44  ;;  %v950_v37 = vmul.f32 1.442695, %v947_v45 }
 0xea2   : > { %2292 = vpow2.f32 %v948_v46 }
 0xea3   : > { %2294 = vpow2.f32 %v950_v37 }
 0xeac   : > { %v2293_v47 = vpop.eup %2292 }
 0xead   : > { %v2295_v49 = vpop.eup %2294 }
 0xeae   : > { %v952_v50 = vadd.f32 %v2295_v49, %v2293_v47 }
 0xeb0   : > { %v953_v51 = vrot.slane %v952_v50, 4 }
 0xeb2   : > { %v954_v52 = vadd.f32 %v953_v51, %v952_v50 }
 0xeb4   : > { %v955_v53 = vrot.slane %v954_v52, 2 }
 0xeb6   : > { %v956_v54 = vadd.f32 %v955_v53, %v954_v52 }
 0xeb8   : > { %v957_v56 = vrot.slane %v956_v54, 1 }
 0xeba   : > { %v958_v57 = vadd.f32 %v957_v56, %v956_v54 }
 0xebc   : > { %2296 = vrcp.f32 %v958_v57 }
 0xec6   : > { %v2297_v58 = vpop.eup %2296 }
 0xec7   : > { %v960_v27 = vmul.f32 %v2297_v58, %v2293_v47  ;;  %v961_v60 = vmul.f32 %v2297_v58, %v2295_v49 }
 0xec9   : > { %v962_v61 = vmul.f32 %v960_v27, %v2816_v41  ;;  %v963_v62 = vmul.f32 %v961_v60, %v2819_v42 }
 0xecb   : > { %v964_v59 = vsel %vm388_vm1, %v962_v61, 0.0  ;;  %v965_v63 = vsel %vm388_vm1, %v963_v62, 0.0 }
 0xecc   : > { %v966_v2 = vadd.f32 %v965_v63, %v964_v59 }
 0xece   : > { %v967_v3 = vrot.slane %v966_v2, 4 }
 0xed0   : > { %v968_v4 = vadd.f32 %v967_v3, %v966_v2 }
 0xed2   : > { %v969_v6 = vrot.slane %v968_v4, 2 }
 0xed4   : > { %v970_v8 = vadd.f32 %v969_v6, %v968_v4 }
 0xed6   : > { %v971_v9 = vrot.slane %v970_v8, 1 }
 0xed8   : > { %v972_v12 = vadd.f32 %v971_v9, %v970_v8 }
 0xeda   : > { %975 = vrot.lane.b32.xlu0 %v972_v12, %s2522_s12 }
 0xf4c   : > { %v976_v15 = vpop.permute.xlu0 %975 }
 0xf4d   : > { %v978_v16 = vsel %vm388_vm1, %v2900_v17, %v976_v15 }
 0xf4e   : > { %1988 = vmatmul.mubr.msk.f32.vlgmr.msra.gmra.mrb[6].mxu1 %vm287_vm2, %v978_v16 }
 0xf4f   : > { %2147 = vmatpush3.bf16.msra.mxu1 %v2785_v31  ;;  %2028 = vmatprep.mubr.msk.f32.mxu1 %vm2518_vm0, %v2519_v1 }
 0xf50   : > { %2148 = vmatprep.subr.bf16.mxu1 %v2517_v0 }
 0xf53   : > { %2150 = vmatpush3.bf16.msra.mxu1 %v2788_v33 }
 0xf54   : > { %2151 = vmatprep.subr.bf16.mxu1 %v2517_v0 }
0x1021   : > { %v1048_v55 = vpop.f32.mrb[6].mxu1 }
0x1022   : > { %v1049_v18 = vadd.f32 %v1048_v55, %v2777_v14  ;;  %v1989_v19 = vpop.f32.mrb[7].mxu1 }
0x1024   : > { %2298 = vtanh.f32 %v1049_v18  ;;  %v1785_v17 = vmul.f32 -1.442695, %v1049_v18 }
0x1026   : > { %2300 = vpow2.f32 %v1785_v17 }
0x102e   : > { %v2299_v20 = vpop.eup %2298 }
0x102f   : > { %1061 = vrot.lane.b32.xlu1 %v2299_v20, %s2520_s15 }
0x1030   : > { %v2301_v21 = vpop.eup %2300 }
0x1031   : > { %v1055_v22 = vadd.f32 1.0, %v2301_v21 }
0x1033   : > { %2302 = vrcp.f32 %v1055_v22 }
0x103d   : > { %v2303_v23 = vpop.eup %2302 }
0x103e   : > { %v1059_v26 = vmul.f32 %v2303_v23, %v2895_v11 }
0x10a1   : > { %v1062_v24 = vpop.permute.xlu1 %1061 }
0x10a2   : > { %v1064_v25 = vmul.f32 %v2303_v23, %v1062_v24 }
0x10a4   : > { %1066 = vrot.lane.b32.xlu0 %v1064_v25, %s2521_s16 }
0x1116   : > { %v1067_v28 = vpop.permute.xlu0 %1066 }
0x1117   : > { %v2939_v29 = vadd.f32 %v1067_v28, %v1059_v26 }
0x1119   : > { %2304 = vtanh.f32 %v2939_v29 }
0x1123   : > { %v2305_v30 = vpop.eup %2304 }
0x1124   : > { %1072 = vrot.lane.b32.xlu1 %v2305_v30, %s2520_s15 }
0x1196   : > { %v1073_v32 = vpop.permute.xlu1 %1072 }
0x1197   : > { %v1075_v34 = vmul.f32 %v2303_v23, %v1073_v32 }
0x1199   : > { %1077 = vrot.lane.b32.xlu0 %v1075_v34, %s2520_s15 }
0x120b   : > { %v2944_v35 = vpop.permute.xlu0 %1077 }
0x120c   : > { %1999 = vmatmul.mubr.msk.f32.vlgmr.msra.gmra.mrb[6].mxu0 %vm388_vm1, %v2944_v35 }
0x120d   : > { %2135 = vmatpush3.bf16.msra.mxu0 %v2755_v5  ;;  %2017 = vmatprep.mubr.msk.f32.mxu0 %vm2518_vm0, %v2519_v1 }
0x120e   : > { %2136 = vmatprep.subr.bf16.mxu0 %v2517_v0 }
0x1211   : > { %2138 = vmatpush3.bf16.msra.mxu0 %v2758_v7 }
0x1212   : > { %2139 = vmatprep.subr.bf16.mxu0 %v2517_v0 }
0x1215   : > { %2141 = vmatpush3.bf16.msra.mxu0 %v2762_v10 }
0x1216   : > { %2142 = vmatprep.subr.bf16.mxu0 %v2517_v0 }
0x1219   : > { %2144 = vmatpush3.bf16.msra.mxu0 %v2766_v13 }
0x121a   : > { %2163 = vmatprep.subr.bf16.mxu0 %v2517_v0 }
0x12df   : > { %v1147_v11 = vpop.f32.mrb[6].mxu0 }
0x12e0   : > { %v1154_v36 = vrot.slane %v1147_v11, %v2813_v40  ;;  %v2000_v38 = vpop.f32.mrb[7].mxu0 }
0x12e2   : > { %v1155_v39 = vadd.f32 %v1154_v36, %v2816_v41  ;;  %v1156_v43 = vadd.f32 %v1154_v36, %v2819_v42 }
0x12e4   : > { %2306 = vtanh.f32 %v1155_v39 }
0x12e5   : > { %2308 = vtanh.f32 %v1156_v43 }
0x12ee   : > { %v2307_v44 = vpop.eup %2306 }
0x12ef   : > { %v2309_v45 = vpop.eup %2308  ;;  %v1159_v46 = vmul.f32 %v2307_v44, %v2827_v48 }
0x12f0   : > { %v1160_v37 = vmul.f32 %v2309_v45, %v2827_v48 }
0x12f1   : > { %v1161_v47 = vsel %vm388_vm1, %v1159_v46, 0.0 }
0x12f2   : > { %v1164_v49 = vsel %vm388_vm1, %v1160_v37, 0.0  ;;  %1162 = vadd.xlane.f32.xlu1 %v1161_v47 }
0x12f3   : > { %1165 = vadd.xlane.f32.xlu0 %v1164_v49 }
0x137f   : > { %v1163_v50 = vpop.xlane.xlu1 %1162 }
0x1380   : > { %v1166_v51 = vpop.xlane.xlu0 %1165 }
0x1381   : > { %v1167_v52 = vmax.f32 %v1163_v50, %v1166_v51 }
0x1383   : > { %v1168_v53 = vrot.slane %v1167_v52, 4 }
0x1385   : > { %v1169_v54 = vmax.f32 %v1167_v52, %v1168_v53 }
0x1387   : > { %v1170_v56 = vrot.slane %v1169_v54, 2 }
0x1389   : > { %v1171_v57 = vmax.f32 %v1169_v54, %v1170_v56 }
0x138b   : > { %v1172_v58 = vrot.slane %v1171_v57, 1 }
0x138d   : > { %v1173_v27 = vmax.f32 %v1171_v57, %v1172_v58 }
0x138f   : > { %v1174_v60 = vsub.f32 %v1163_v50, %v1173_v27  ;;  %v1175_v61 = vsub.f32 %v1166_v51, %v1173_v27 }
0x1391   : > { %v1176_v62 = vmul.f32 1.442695, %v1174_v60  ;;  %v1178_v59 = vmul.f32 1.442695, %v1175_v61 }
0x1393   : > { %2310 = vpow2.f32 %v1176_v62 }
0x1394   : > { %2312 = vpow2.f32 %v1178_v59 }
0x139d   : > { %v2311_v63 = vpop.eup %2310 }
0x139e   : > { %v2313_v2 = vpop.eup %2312 }
0x139f   : > { %v1180_v3 = vadd.f32 %v2313_v2, %v2311_v63 }
0x13a1   : > { %v1181_v4 = vrot.slane %v1180_v3, 4 }
0x13a3   : > { %v1182_v6 = vadd.f32 %v1181_v4, %v1180_v3 }
0x13a5   : > { %v1183_v8 = vrot.slane %v1182_v6, 2 }
0x13a7   : > { %v1184_v9 = vadd.f32 %v1183_v8, %v1182_v6 }
0x13a9   : > { %v1185_v12 = vrot.slane %v1184_v9, 1 }
0x13ab   : > { %v1186_v15 = vadd.f32 %v1185_v12, %v1184_v9 }
0x13ad   : > { %2314 = vrcp.f32 %v1186_v15 }
0x13b7   : > { %v2315_v16 = vpop.eup %2314 }
0x13b8   : > { %v1188_v55 = vmul.f32 %v2315_v16, %v2311_v63  ;;  %v1189_v18 = vmul.f32 %v2315_v16, %v2313_v2 }
0x13ba   : > { %v1190_v19 = vmul.f32 %v1188_v55, %v2816_v41  ;;  %v1191_v20 = vmul.f32 %v1189_v18, %v2819_v42 }
0x13bc   : > { %v1192_v17 = vsel %vm388_vm1, %v1190_v19, 0.0  ;;  %v1193_v21 = vsel %vm388_vm1, %v1191_v20, 0.0 }
0x13bd   : > { %v1194_v22 = vadd.f32 %v1193_v21, %v1192_v17 }
0x13bf   : > { %v1195_v23 = vrot.slane %v1194_v22, 4 }
0x13c1   : > { %v1196_v24 = vadd.f32 %v1195_v23, %v1194_v22 }
0x13c3   : > { %v1197_v25 = vrot.slane %v1196_v24, 2 }
0x13c5   : > { %v1198_v26 = vadd.f32 %v1197_v25, %v1196_v24 }
0x13c7   : > { %v1199_v28 = vrot.slane %v1198_v26, 1 }
0x13c9   : > { %v1200_v30 = vadd.f32 %v1199_v28, %v1198_v26 }
0x13cb   : > { %1203 = vrot.lane.b32.xlu0 %v1200_v30, %s2522_s12 }
0x143d   : > { %v1204_v32 = vpop.permute.xlu0 %1203 }
0x143e   : > { %v1206_v34 = vsel %vm388_vm1, %v2944_v35, %v1204_v32 }
0x143f   : > { %2018 = vmatmul.mubr.msk.f32.vlgmr.msra.gmra.mrb[8].mxu0 %vm287_vm2, %v1206_v34 }
0x1440   : > { %2165 = vmatpush3.bf16.msra.mxu0 %v2785_v31  ;;  %2058 = vmatprep.mubr.msk.f32.mxu0 %vm2518_vm0, %v2519_v1 }
0x1441   : > { %2166 = vmatprep.subr.bf16.mxu0 %v2517_v0 }
0x1444   : > { %2168 = vmatpush3.bf16.msra.mxu0 %v2788_v33 }
0x1512   : > { %v1276_v11 = vpop.f32.mrb[8].mxu0 }
0x1513   : > { %v1277_v36 = vadd.f32 %v1276_v11, %v2777_v14  ;;  %v2019_v38 = vpop.f32.mrb[9].mxu0 }
0x1515   : > { %2316 = vtanh.f32 %v1277_v36  ;;  %v1788_v35 = vmul.f32 -1.442695, %v1277_v36 }
0x1517   : > { %2318 = vpow2.f32 %v1788_v35 }
0x151f   : > { %v2317_v39 = vpop.eup %2316 }
0x1520   : > { %1289 = vrot.lane.b32.xlu1 %v2317_v39, %s2520_s15 }
0x1521   : > { %v2319_v43 = vpop.eup %2318 }
0x1522   : > { %v1283_v44 = vadd.f32 1.0, %v2319_v43 }
0x1524   : > { %2320 = vrcp.f32 %v1283_v44 }
0x152e   : > { %v2321_v31 = vpop.eup %2320 }
0x152f   : > { %v1287_v33 = vmul.f32 %v2321_v31, %v2939_v29 }
0x1592   : > { %v1290_v45 = vpop.permute.xlu1 %1289 }
0x1593   : > { %v1292_v46 = vmul.f32 %v2321_v31, %v1290_v45 }
0x1595   : > { %1294 = vrot.lane.b32.xlu1 %v1292_v46, %s2521_s16 }
0x1607   : > { %v1295_v37 = vpop.permute.xlu1 %1294 }
0x1608   : > { %v2982_v47 = vadd.f32 %v1295_v37, %v1287_v33 }
0x160a   : > { %2322 = vtanh.f32 %v2982_v47 }
0x1614   : > { %v2323_v49 = vpop.eup %2322 }
0x1615   : > { %1300 = vrot.lane.b32.xlu0 %v2323_v49, %s2520_s15 }
0x1687   : > { %v1301_v50 = vpop.permute.xlu0 %1300 }
0x1688   : > { %v1303_v51 = vmul.f32 %v2321_v31, %v1301_v50 }
0x168a   : > { %1305 = vrot.lane.b32.xlu1 %v1303_v51, %s2520_s15 }
0x16fc   : > { %v2987_v52 = vpop.permute.xlu1 %1305 }
0x16fd   : > { %2029 = vmatmul.mubr.msk.f32.vlgmr.msra.gmra.mrb[8].mxu1 %vm388_vm1, %v2987_v52 }
0x16fe   : > { %2153 = vmatpush3.bf16.msra.mxu1 %v2755_v5  ;;  %2047 = vmatprep.mubr.msk.f32.mxu1 %vm2518_vm0, %v2519_v1 }
0x16ff   : > { %2154 = vmatprep.subr.bf16.mxu1 %v2517_v0 }
0x1702   : > { %2156 = vmatpush3.bf16.msra.mxu1 %v2758_v7 }
0x1703   : > { %2157 = vmatprep.subr.bf16.mxu1 %v2517_v0 }
0x1706   : > { %2159 = vmatpush3.bf16.msra.mxu1 %v2762_v10 }
0x1707   : > { %2160 = vmatprep.subr.bf16.mxu1 %v2517_v0 }
0x170a   : > { %2162 = vmatpush3.bf16.msra.mxu1 %v2766_v13 }
0x17d0   : > { %v1375_v29 = vpop.f32.mrb[8].mxu1 }
0x17d1   : > { %v1382_v53 = vrot.slane %v1375_v29, %v2813_v40  ;;  %v2030_v54 = vpop.f32.mrb[9].mxu1 }
0x17d3   : > { %v1383_v5 = vadd.f32 %v1382_v53, %v2816_v41  ;;  %v1384_v1 = vadd.f32 %v1382_v53, %v2819_v42 }
0x17d5   : > { %2324 = vtanh.f32 %v1383_v5 }
0x17d6   : > { %2326 = vtanh.f32 %v1384_v1 }
0x17df   : > { %v2325_v56 = vpop.eup %2324 }
0x17e0   : > { %v2327_v7 = vpop.eup %2326  ;;  %v1387_v57 = vmul.f32 %v2325_v56, %v2827_v48 }
0x17e1   : > { %v1388_v10 = vmul.f32 %v2327_v7, %v2827_v48 }
0x17e2   : > { %v1389_v0 = vsel %vm388_vm1, %v1387_v57, 0.0 }
0x17e3   : > { %v1392_v13 = vsel %vm388_vm1, %v1388_v10, 0.0  ;;  %1390 = vadd.xlane.f32.xlu0 %v1389_v0 }
0x17e4   : > { %1393 = vadd.xlane.f32.xlu1 %v1392_v13 }
0x1870   : > { %v1391_v58 = vpop.xlane.xlu0 %1390 }
0x1871   : > { %v1394_v27 = vpop.xlane.xlu1 %1393 }
0x1872   : > { %v1395_v60 = vmax.f32 %v1391_v58, %v1394_v27 }
0x1874   : > { %v1396_v61 = vrot.slane %v1395_v60, 4 }
0x1876   : > { %v1397_v62 = vmax.f32 %v1395_v60, %v1396_v61 }
0x1878   : > { %v1398_v59 = vrot.slane %v1397_v62, 2 }
0x187a   : > { %v1399_v63 = vmax.f32 %v1397_v62, %v1398_v59 }
0x187c   : > { %v1400_v2 = vrot.slane %v1399_v63, 1 }
0x187e   : > { %v1401_v3 = vmax.f32 %v1399_v63, %v1400_v2 }
0x1880   : > { %v1402_v4 = vsub.f32 %v1391_v58, %v1401_v3  ;;  %v1403_v6 = vsub.f32 %v1394_v27, %v1401_v3 }
0x1882   : > { %v1404_v8 = vmul.f32 1.442695, %v1402_v4  ;;  %v1406_v9 = vmul.f32 1.442695, %v1403_v6 }
0x1884   : > { %2328 = vpow2.f32 %v1404_v8 }
0x1885   : > { %2330 = vpow2.f32 %v1406_v9 }
0x188e   : > { %v2329_v12 = vpop.eup %2328 }
0x188f   : > { %v2331_v15 = vpop.eup %2330 }
0x1890   : > { %v1408_v16 = vadd.f32 %v2331_v15, %v2329_v12 }
0x1892   : > { %v1409_v55 = vrot.slane %v1408_v16, 4 }
0x1894   : > { %v1410_v18 = vadd.f32 %v1409_v55, %v1408_v16 }
0x1896   : > { %v1411_v19 = vrot.slane %v1410_v18, 2 }
0x1898   : > { %v1412_v20 = vadd.f32 %v1411_v19, %v1410_v18 }
0x189a   : > { %v1413_v17 = vrot.slane %v1412_v20, 1 }
0x189c   : > { %v1414_v21 = vadd.f32 %v1413_v17, %v1412_v20 }
0x189e   : > { %2332 = vrcp.f32 %v1414_v21 }
0x18a8   : > { %v2333_v22 = vpop.eup %2332 }
0x18a9   : > { %v1416_v23 = vmul.f32 %v2333_v22, %v2329_v12  ;;  %v1417_v24 = vmul.f32 %v2333_v22, %v2331_v15 }
0x18ab   : > { %v1418_v25 = vmul.f32 %v1416_v23, %v2816_v41  ;;  %v1419_v26 = vmul.f32 %v1417_v24, %v2819_v42 }
0x18ad   : > { %v1420_v28 = vsel %vm388_vm1, %v1418_v25, 0.0  ;;  %v1421_v30 = vsel %vm388_vm1, %v1419_v26, 0.0 }
0x18ae   : > { %v1422_v32 = vadd.f32 %v1421_v30, %v1420_v28  ;;  %v2352_v28 = vld [vmem:[%s2739_s9] sm:$0xff] }
0x18b0   : > { %v1423_v34 = vrot.slane %v1422_v32, 4 }
0x18b2   : > { %v1424_v11 = vadd.f32 %v1423_v34, %v1422_v32  ;;  %v2353_v32 = vld [vmem:[%s2739_s9 + $0x8] sm:$0xff]  ;;  %s2523_s9 = smov [#allocation8]  }
0x18b3   : > { %s2444_s24 = sshll.u32 %s2523_s9, 4  ;;  %s2445_s24 = int_to_ptr.vmem [resolvable:$false] %s2444_s24 }
0x18b4   : > { %v1425_v36 = vrot.slane %v1424_v11, 2  ;;  %s2446_s26 = scalar_lea.vmem %s2445_s24, 32  ;;  %p2447_p7 = scmp.lt.s32.totalorder %s3044_s11, %s2445_s24 }
0x18b5   : > { %p2448_p9 = scmp.lt.s32.totalorder %s2446_s26, %s2440_s22 }
0x18b6   : > { %v1426_v38 = vadd.f32 %v1425_v36, %v1424_v11 }
0x18b7   : > { %p2449_p12 = por %p2448_p9, %p2447_p7 }
0x18b8   : > { %v1427_v39 = vrot.slane %v1426_v38, 1 }
0x18b9   : > { %p2450_p1 = pnand %p2449_p12, %p2443_p3 }
0x18ba   : > { %v1428_v35 = vadd.f32 %v1427_v39, %v1426_v38 }
0x18bc   : > { %1431 = vrot.lane.b32.xlu0 %v1428_v35, %s2522_s12 }
0x192e   : > { %v1432_v43 = vpop.permute.xlu0 %1431 }
0x192f   : > { %v1434_v44 = vsel %vm388_vm1, %v2987_v52, %v1432_v43 }
0x1930   : > { %2048 = vmatmul.mubr.msk.f32.vlgmr.msra.gmra.mrb[10].mxu1 %vm287_vm2, %v1434_v44 }
0x1a03   : > { %v1504_v31 = vpop.f32.mrb[10].mxu1 }
0x1a04   : > { %v1505_v45 = vadd.f32 %v1504_v31, %v2777_v14  ;;  %v2049_v46 = vpop.f32.mrb[11].mxu1 }
0x1a06   : > { %2334 = vtanh.f32 %v1505_v45  ;;  %v1791_v37 = vmul.f32 -1.442695, %v1505_v45 }
0x1a08   : > { %2336 = vpow2.f32 %v1791_v37 }
0x1a10   : > { %v2335_v33 = vpop.eup %2334 }
0x1a11   : > { %1517 = vrot.lane.b32.xlu1 %v2335_v33, %s2520_s15 }
0x1a12   : > { %v2337_v49 = vpop.eup %2336 }
0x1a13   : > { %v1511_v50 = vadd.f32 1.0, %v2337_v49 }
0x1a15   : > { %2338 = vrcp.f32 %v1511_v50 }
0x1a1f   : > { %v2339_v51 = vpop.eup %2338 }
0x1a20   : > { %v1515_v52 = vmul.f32 %v2339_v51, %v2982_v47 }
0x1a83   : > { %v1518_v29 = vpop.permute.xlu1 %1517 }
0x1a84   : > { %v1520_v53 = vmul.f32 %v2339_v51, %v1518_v29 }
0x1a86   : > { %1522 = vrot.lane.b32.xlu0 %v1520_v53, %s2521_s16 }
0x1af8   : > { %v1523_v54 = vpop.permute.xlu0 %1522 }
0x1af9   : > { %v1525_v5 = vadd.f32 %v1523_v54, %v1515_v52 }
0x1afb   : > { %2340 = vtanh.f32 %v1525_v5 }
0x1b05   : > { %v2341_v14 = vpop.eup %2340 }
0x1b06   : > { %1528 = vrot.lane.b32.xlu1 %v2341_v14, %s2520_s15 }
0x1b78   : > { %v1529_v1 = vpop.permute.xlu1 %1528 }
0x1b79   : > { %v1531_v56 = vmul.f32 %v2339_v51, %v1529_v1 }
0x1b7b   : > { %1533 = vrot.lane.b32.xlu0 %v1531_v56, %s2520_s15 }
0x1bed   : > { %v3021_v7 = vpop.permute.xlu0 %1533 }
0x1bee   : > { %2059 = vmatmul.mubr.msk.f32.vlgmr.msra.gmra.mrb[10].mxu0 %vm388_vm1, %v3021_v7 }
0x1cc1   : > { %v1603_v57 = vpop.f32.mrb[10].mxu0 }
0x1cc2   : > { %v1610_v10 = vrot.slane %v1603_v57, %v2813_v40  ;;  %v2060_v0 = vpop.f32.mrb[11].mxu0 }
0x1cc4   : > { %v1611_v47 = vadd.f32 %v1610_v10, %v2816_v41  ;;  %v1612_v13 = vadd.f32 %v1610_v10, %v2819_v42 }
0x1cc6   : > { %2342 = vtanh.f32 %v1611_v47 }
0x1cc7   : > { %2344 = vtanh.f32 %v1612_v13 }
0x1cd0   : > { %v2343_v58 = vpop.eup %2342 }
0x1cd1   : > { %v2345_v27 = vpop.eup %2344  ;;  %v1615_v60 = vmul.f32 %v2343_v58, %v2827_v48 }
0x1cd2   : > { %v1616_v61 = vmul.f32 %v2345_v27, %v2827_v48 }
0x1cd3   : > { %v1617_v62 = vsel %vm388_vm1, %v1615_v60, 0.0 }
0x1cd4   : > { %v1620_v59 = vsel %vm388_vm1, %v1616_v61, 0.0  ;;  %1618 = vadd.xlane.f32.xlu1 %v1617_v62 }
0x1cd5   : > { %1621 = vadd.xlane.f32.xlu0 %v1620_v59 }
0x1d61   : > { %v1619_v40 = vpop.xlane.xlu1 %1618 }
0x1d62   : > { %v1622_v63 = vpop.xlane.xlu0 %1621 }
0x1d63   : > { %v1623_v2 = vmax.f32 %v1619_v40, %v1622_v63 }
0x1d65   : > { %v1624_v41 = vrot.slane %v1623_v2, 4 }
0x1d67   : > { %v1625_v3 = vmax.f32 %v1623_v2, %v1624_v41 }
0x1d69   : > { %v1626_v42 = vrot.slane %v1625_v3, 2 }
0x1d6b   : > { %v1627_v4 = vmax.f32 %v1625_v3, %v1626_v42 }
0x1d6d   : > { %v1628_v6 = vrot.slane %v1627_v4, 1 }
0x1d6f   : > { %v1629_v8 = vmax.f32 %v1627_v4, %v1628_v6 }
0x1d71   : > { %v1630_v9 = vsub.f32 %v1619_v40, %v1629_v8  ;;  %v1631_v12 = vsub.f32 %v1622_v63, %v1629_v8 }
0x1d73   : > { %v1632_v15 = vmul.f32 1.442695, %v1630_v9  ;;  %v1634_v16 = vmul.f32 1.442695, %v1631_v12 }
0x1d75   : > { %2346 = vpow2.f32 %v1632_v15 }
0x1d76   : > { %2348 = vpow2.f32 %v1634_v16 }
0x1d7f   : > { %v2347_v48 = vpop.eup %2346 }
0x1d80   : > { %v2349_v55 = vpop.eup %2348 }
0x1d81   : > { %v1636_v18 = vadd.f32 %v2349_v55, %v2347_v48 }
0x1d83   : > { %v1637_v19 = vrot.slane %v1636_v18, 4 }
0x1d85   : > { %v1638_v20 = vadd.f32 %v1637_v19, %v1636_v18 }
0x1d87   : > { %v1639_v17 = vrot.slane %v1638_v20, 2 }
0x1d89   : > { %v1640_v21 = vadd.f32 %v1639_v17, %v1638_v20 }
0x1d8b   : > { %v1641_v22 = vrot.slane %v1640_v21, 1 }
0x1d8d   : > { %v1642_v23 = vadd.f32 %v1641_v22, %v1640_v21 }
0x1d8f   : > { %2350 = vrcp.f32 %v1642_v23 }
0x1d99   : > { %v2351_v24 = vpop.eup %2350 }
0x1d9a   : > { %v1644_v25 = vmul.f32 %v2351_v24, %v2347_v48  ;;  %v1645_v26 = vmul.f32 %v2351_v24, %v2349_v55 }
0x1d9c   : > { %v1646_v30 = vmul.f32 %v2352_v28, %v1644_v25  ;;  %v1647_v34 = vmul.f32 %v2353_v32, %v1645_v26 }
0x1d9e   : > { %v1648_v11 = vsel %vm388_vm1, %v1646_v30, 0.0  ;;  %v1649_v36 = vsel %vm388_vm1, %v1647_v34, 0.0 }
0x1d9f   : > { %v1650_v38 = vadd.f32 %v1649_v36, %v1648_v11 }
0x1da1   : > { %v1651_v39 = vrot.slane %v1650_v38, 4 }
0x1da3   : > { %v1652_v35 = vadd.f32 %v1651_v39, %v1650_v38 }
0x1da5   : > { %v1653_v43 = vrot.slane %v1652_v35, 2 }
0x1da7   : > { %v1654_v44 = vadd.f32 %v1653_v43, %v1652_v35 }
0x1da9   : > { %v1655_v31 = vrot.slane %v1654_v44, 1 }
0x1dab   : > { %v1656_v45 = vadd.f32 %v1655_v31, %v1654_v44 }
0x1dad   : > { %1659 = vrot.lane.b32.xlu0 %v1656_v45, %s2522_s12 }
0x1e1f   : > { %v1660_v46 = vpop.permute.xlu0 %1659 }
0x1e20   : > { %v1662_v33 = vsel %vm388_vm1, %v3021_v7, %v1660_v46 }
0x1e21   : > { %1664 = vst.msk [vmem:[%s270_s30] sm:$0x1] %vm1663_vm3, %v1662_v33 }
0x1e22   : > { %2453 = shalt.err (!%p2450_p1)
}
0x1e23   : > { %s2454_s14 = scalar_lea.hbm %s3042_s6, 16  ;;  %s2458_s10 = scalar_lea.hbm %s3093_s5, 32 }
0x1e24   : > { %p2455_p13 = scmp.ne.s32.totalorder %s3042_s6, %s2454_s14  ;;  %p2459_p4 = scmp.lt.u32.totalorder %s3042_s6, %s3093_s5 }
0x1e25   : > { %p2460_p5 = scmp.lt.u32.totalorder %s2458_s10, %s2454_s14  ;;  %p2462_p11 = scmp.lt.u32.totalorder %s2454_s14, %s3042_s6 }
0x1e26   : > { %p2456_p6 = pnand %p2455_p13, %p3107_p0 }
0x1e27   : > { %p2461_p8 = por %p2460_p5, %p2459_p4 }
0x1e28   : > { %p2457_p10 = pneg %p2456_p6 }
0x1e29   : > { %p2463_p2 = por %p2462_p11, %p2461_p8 }
0x1e2b   : > { %p2464_p3 = pnand %p2463_p2, %p2457_p10 }
0x1e2d   : > { %2467 = shalt.err (!%p2464_p3)
}
0x1e2e   : > { %2179 = dma.vmem_to_hbm [thread:$0]  (%p3107_p0), %s3044_s11, 16, %s3042_s6, %s1666_s8  }
0x1e2f PF: > { %s1690_s13 = sand.u32 1, %s2498_s18   ;;  %p3108_p7 = scmp.ne.s32.totalorder %s3098_s25, 0 }
0x1e30   : > { %p3109_p9 = scmp.ge.s32.totalorder %s2510_s21, 2  ;;  %s1691_s30 = scalar_lea.sflag [#allocation4], %s1690_s13 }
0x1e32   : > { %p2193_p12 = pnand %p3109_p9, %p3108_p7 }
0x1e34   : > { %2493 = dma.done.wait (!%p2193_p12), %s1691_s30, 16  }
0x1e35   : > { %2495 = vsyncadd (!%p2193_p12), %s1691_s30, 4294967280  ;;  %p19_p1 = scmp.ge.s32.totalorder %s2670_s29, 4   ;;  %s3110_s18 = smov %s2502_s19 }
0x1e36   : > { %s3111_s19 = smov %s2506_s20  ;;  %s3112_s20 = smov %s2686_s27 }
0x1e37   : > { %s3113_s21 = smov %s2670_s29  ;;  %21 = sbr.rel (!%p19_p1) target bundleno = 6 (0x6), region = 93 }
0x1e3e   :  { %1695 = vsyncpa [#allocation3], 1 }
0x1e3f   :  { %1697 = vsyncpa [#allocation3 + $0x1], 1 }
0x1e40   :  { %1698 = vsyncpa [#allocation6], 1 }
0x1e41   :  { %1699 = vsyncpa [#allocation4], 1 }
0x1e42   :  { %1701 = vsyncpa [#allocation4 + $0x1], 1 }

</bundles_post_ra>
